<compile_context>
chip_gen: v6e
topology: v6e:2x2x1
jax: 0.10.0
libtpu: 0.0.40
codegen_flags: <defaults>
</compile_context>

<pallas_src>
import functools
import math

import jax
import jax.numpy as jnp
from jax.experimental import pallas as pl
from jax.experimental.pallas import tpu as pltpu  # noqa: F401  (kept for parity)

# ---------------- small GPT-2-like config ----------------
VOCAB = 256
N_EMBD = 32
N_HEAD = 4
HEAD_DIM = N_EMBD // N_HEAD
N_LAYER = 2
SEQ = 8
BATCH = 2
LORA_R = 8
LORA_ALPHA = 16
LORA_SCALE = LORA_ALPHA / LORA_R
LN_EPS = 1e-5
ATTN_SCALE = 1.0 / math.sqrt(HEAD_DIM)   # Python float (never a tracer)
NEG_INF = -1e9                           # f32-safe mask sentinel
PER_LAYER_REFS = 12


# ---------------- in-kernel helpers (pure jnp, traced into the kernel) ----------------
def _layer_norm(x, g, b):
    mu = jnp.mean(x, axis=-1, keepdims=True)
    var = jnp.mean(jnp.square(x - mu), axis=-1, keepdims=True)
    return (x - mu) * jax.lax.rsqrt(var + LN_EPS) * g + b


def _gelu_new(x):
    # GPT-2 "gelu_new" (tanh approximation) — tanh goes to the EUP slot.
    c = math.sqrt(2.0 / math.pi)
    return 0.5 * x * (1.0 + jnp.tanh(c * (x + 0.044715 * x * x * x)))


# ---------------- single fused forward kernel (all layers + final LN + lm_head) ----------------
def _forward_kernel(h_ref, bias_ref, *refs, batch, seq, n_layer):
    # refs layout: [12 per-layer refs] * n_layer, ln_f_g, ln_f_b, lm_head_w, out
    o_ref = refs[-1]
    lmw_ref = refs[-2]
    lnf_b_ref = refs[-3]
    lnf_g_ref = refs[-4]
    layer_refs = refs[:-4]

    h = h_ref[...]                                            # (B*S, D) f32, stays resident
    bias = bias_ref[...]                                      # (B, S) additive key-padding bias

    # causal mask built once; per-batch masked additive bias hoisted out of the
    # layer/head loops and reused everywhere (no per-head select / broadcast).
    row = jax.lax.broadcasted_iota(jnp.int32, (seq, seq), 0)
    col = jax.lax.broadcasted_iota(jnp.int32, (seq, seq), 1)
    causal = row >= col
    masked_bias = [jnp.where(causal, bias[b:b + 1, :], jnp.float32(NEG_INF))
                   for b in range(batch)]                     # each (S, S)

    for l in range(n_layer):
        (ln1_g, ln1_b, ln2_g, ln2_b,
         w_qkv, b_qkv, w_ao, b_ao,
         w_fc, b_fc, w_mo, b_mo) = layer_refs[l * PER_LAYER_REFS:(l + 1) * PER_LAYER_REFS]

        # ---- attention block ----
        x = _layer_norm(h, ln1_g[...], ln1_b[...])
        # c_attn with LoRA + 1/sqrt(Dh) already folded into the weights/bias.
        qkv = jnp.dot(x, w_qkv[...], preferred_element_type=jnp.float32) + b_qkv[...]  # (B*S, 3D)

        ctx_rows = []
        for b in range(batch):
            r0, r1 = b * seq, (b + 1) * seq
            mb = masked_bias[b]                               # (S, S), precomputed
            outs, denoms = [], []
            for hd in range(N_HEAD):
                c0 = hd * HEAD_DIM
                q = qkv[r0:r1, c0:c0 + HEAD_DIM]                              # (S, Dh), pre-scaled
                k = qkv[r0:r1, N_EMBD + c0:N_EMBD + c0 + HEAD_DIM]            # (S, Dh)
                v = qkv[r0:r1, 2 * N_EMBD + c0:2 * N_EMBD + c0 + HEAD_DIM]    # (S, Dh)

                # scores = q @ k^T  (contraction on Dh; no explicit transpose)
                s = jax.lax.dot_general(q, k, (((1,), (1,)), ((), ())),
                                        preferred_element_type=jnp.float32)   # (S, S)
                s = s + mb
                m = jnp.max(s, axis=-1, keepdims=True)
                p = jnp.exp(s - m)
                outs.append(jnp.dot(p, v, preferred_element_type=jnp.float32))  # (S, Dh) unnorm.
                denoms.append(jnp.sum(p, axis=-1, keepdims=True))               # (S, 1)

            # one EUP reciprocal per batch on the stacked denominators
            inv = pl.reciprocal(jnp.concatenate(denoms, axis=-1), approx=True)  # (S, H)
            # lane-dense head merge via values (no scratch, no masked partial stores)
            ctx_rows.append(jnp.concatenate(
                [outs[hd] * inv[:, hd:hd + 1] for hd in range(N_HEAD)], axis=-1))  # (S, D)

        ctx = jnp.concatenate(ctx_rows, axis=0)                                  # (B*S, D)

        attn_out = jnp.dot(ctx, w_ao[...], preferred_element_type=jnp.float32) + b_ao[...]
        h = h + attn_out

        # ---- mlp block ----
        x = _layer_norm(h, ln2_g[...], ln2_b[...])
        ff = jnp.dot(x, w_fc[...], preferred_element_type=jnp.float32) + b_fc[...]   # (B*S, 4D)
        ff = _gelu_new(ff)
        mlp_out = jnp.dot(ff, w_mo[...], preferred_element_type=jnp.float32) + b_mo[...]
        h = h + mlp_out

    # ---- final layernorm + tied lm_head (lane-dense (B*S, VOCAB) output) ----
    x = _layer_norm(h, lnf_g_ref[...], lnf_b_ref[...])
    o_ref[...] = jnp.dot(x, lmw_ref[...], preferred_element_type=jnp.float32).astype(o_ref.dtype)


def fused_forward(h, mask_bias, fast):
    M, _ = h.shape
    B, S = mask_bias.shape
    V = fast["lm_head_w"].shape[1]
    n_layer = len(fast["layers"])

    args = [h, mask_bias]
    for lyr in fast["layers"]:
        args += [lyr["ln1_g"], lyr["ln1_b"], lyr["ln2_g"], lyr["ln2_b"],
                 lyr["w_qkv"], lyr["b_qkv"],
                 lyr["w_attn_out"], lyr["b_attn_out"],
                 lyr["w_fc"], lyr["b_fc"],
                 lyr["w_mlp_out"], lyr["b_mlp_out"]]
    args += [fast["ln_f_g"], fast["ln_f_b"], fast["lm_head_w"]]

    kern = functools.partial(_forward_kernel, batch=B, seq=S, n_layer=n_layer)
    return pl.pallas_call(
        kern,
        out_shape=jax.ShapeDtypeStruct((M, V), jnp.float32),
    )(*args)


# ---------------- parameter init (raw LoRA params) ----------------
def init_params(key):
    def nrm(k, shape, std=0.02):
        return std * jax.random.normal(k, shape, dtype=jnp.float32)

    keys = iter(jax.random.split(key, 64))
    params = {
        "wte": nrm(next(keys), (VOCAB, N_EMBD)),
        "wpe": nrm(next(keys), (SEQ, N_EMBD)),
        "ln_f_g": jnp.ones((N_EMBD,), jnp.float32),
        "ln_f_b": jnp.zeros((N_EMBD,), jnp.float32),
        "layers": [],
    }
    for _ in range(N_LAYER):
        lyr = {
            "ln1_g": jnp.ones((N_EMBD,), jnp.float32),
            "ln1_b": jnp.zeros((N_EMBD,), jnp.float32),
            "ln2_g": jnp.ones((N_EMBD,), jnp.float32),
            "ln2_b": jnp.zeros((N_EMBD,), jnp.float32),
            # attention (Conv1D convention: W is (in, out)); c_attn + c_proj carry LoRA
            "c_attn_w": nrm(next(keys), (N_EMBD, 3 * N_EMBD)),
            "c_attn_b": jnp.zeros((3 * N_EMBD,), jnp.float32),
            "c_attn_A": nrm(next(keys), (N_EMBD, LORA_R)),
            "c_attn_B": nrm(next(keys), (LORA_R, 3 * N_EMBD), std=0.01),
            "attn_proj_w": nrm(next(keys), (N_EMBD, N_EMBD)),
            "attn_proj_b": jnp.zeros((N_EMBD,), jnp.float32),
            "attn_proj_A": nrm(next(keys), (N_EMBD, LORA_R)),
            "attn_proj_B": nrm(next(keys), (LORA_R, N_EMBD), std=0.01),
            # mlp (c_fc has no LoRA; mlp c_proj does)
            "c_fc_w": nrm(next(keys), (N_EMBD, 4 * N_EMBD)),
            "c_fc_b": jnp.zeros((4 * N_EMBD,), jnp.float32),
            "mlp_proj_w": nrm(next(keys), (4 * N_EMBD, N_EMBD)),
            "mlp_proj_b": jnp.zeros((N_EMBD,), jnp.float32),
            "mlp_proj_A": nrm(next(keys), (4 * N_EMBD, LORA_R)),
            "mlp_proj_B": nrm(next(keys), (LORA_R, N_EMBD), std=0.01),
        }
        params["layers"].append(lyr)
    return params


# ---------------- inference-time parameter prep ----------------
def merge_lora_params(params):
    """Fold LoRA into base weights (exact in inference mode: LoRA dropout = identity),
    fold the 1/sqrt(head_dim) attention scale into the Q slice of c_attn, reshape all
    vectors to (1, N), and pre-transpose the tied lm_head weight. Done once, outside jit."""
    qkv_scale = jnp.concatenate([
        jnp.full((N_EMBD,), ATTN_SCALE, jnp.float32),
        jnp.ones((2 * N_EMBD,), jnp.float32),
    ])
    fast = {
        "wte": params["wte"],
        "wpe": params["wpe"],
        "ln_f_g": params["ln_f_g"].reshape(1, -1),
        "ln_f_b": params["ln_f_b"].reshape(1, -1),
        "lm_head_w": params["wte"].T,            # tied head, transposed once
        "layers": [],
    }
    for lyr in params["layers"]:
        w_qkv = lyr["c_attn_w"] + LORA_SCALE * (lyr["c_attn_A"] @ lyr["c_attn_B"])
        w_ao = lyr["attn_proj_w"] + LORA_SCALE * (lyr["attn_proj_A"] @ lyr["attn_proj_B"])
        w_mo = lyr["mlp_proj_w"] + LORA_SCALE * (lyr["mlp_proj_A"] @ lyr["mlp_proj_B"])
        fast["layers"].append({
            "ln1_g": lyr["ln1_g"].reshape(1, -1), "ln1_b": lyr["ln1_b"].reshape(1, -1),
            "ln2_g": lyr["ln2_g"].reshape(1, -1), "ln2_b": lyr["ln2_b"].reshape(1, -1),
            "w_qkv": w_qkv * qkv_scale[None, :],
            "b_qkv": (lyr["c_attn_b"] * qkv_scale).reshape(1, -1),
            "w_attn_out": w_ao, "b_attn_out": lyr["attn_proj_b"].reshape(1, -1),
            "w_fc": lyr["c_fc_w"], "b_fc": lyr["c_fc_b"].reshape(1, -1),
            "w_mlp_out": w_mo, "b_mlp_out": lyr["mlp_proj_b"].reshape(1, -1),
        })
    return fast


# ---------------- forward pass ----------------
def lora_gpt2_forward(fast, input_ids, attention_mask=None, labels=None):
    B, S = input_ids.shape
    # embedding gather + position embeddings (plain JAX)
    h = jnp.take(fast["wte"], input_ids, axis=0) + fast["wpe"][:S][None, :, :]

    if attention_mask is None:
        attention_mask = jnp.ones((B, S), jnp.int32)
    # additive key-padding bias, (B, S); expanded per-batch inside the kernel (no repeat)
    mask_bias = jnp.where(attention_mask > 0, 0.0, NEG_INF).astype(jnp.float32)

    h = h.reshape(B * S, N_EMBD)
    logits = fused_forward(h, mask_bias, fast)   # ONE pallas_call for the whole stack
    logits = logits.reshape(B, S, VOCAB)

    loss = None
    if labels is not None:
        # GPT-2 causal-LM loss: shift logits left, labels right; mean CE (no -100 here).
        shift_logits = logits[:, :-1, :]
        shift_labels = labels[:, 1:]
        logp = jax.nn.log_softmax(shift_logits, axis=-1)
        nll = -jnp.take_along_axis(logp, shift_labels[..., None], axis=-1)[..., 0]
        loss = jnp.mean(nll)

    return loss, logits


if __name__ == "__main__":
    key = jax.random.PRNGKey(0)
    pkey, dkey = jax.random.split(key)
    params = init_params(pkey)
    fast_params = merge_lora_params(params)   # LoRA merge + scale folding, once

    input_ids = jax.random.randint(dkey, (BATCH, SEQ), 0, VOCAB, dtype=jnp.int32)
    attention_mask = jnp.ones((BATCH, SEQ), jnp.int32)
    labels = input_ids

    fwd = jax.jit(lambda p, ids, am, lb: lora_gpt2_forward(p, ids, am, lb))
    loss, logits = fwd(fast_params, input_ids, attention_mask, labels)
    jax.block_until_ready((loss, logits))

    assert logits.shape == (BATCH, SEQ, VOCAB)
    assert loss.shape == ()
    assert bool(jnp.isfinite(loss))
    print("KERNEL_OK")
</pallas_src>

<mosaic_0001>
module attributes {stable_mosaic.version = 11 : i64} {
  func.func @_forward_kernel(%arg0: memref<16x32xf32, #tpu.memory_space<vmem>>, %arg1: memref<2x8xf32, #tpu.memory_space<vmem>>, %arg2: memref<1x32xf32, #tpu.memory_space<vmem>>, %arg3: memref<1x32xf32, #tpu.memory_space<vmem>>, %arg4: memref<1x32xf32, #tpu.memory_space<vmem>>, %arg5: memref<1x32xf32, #tpu.memory_space<vmem>>, %arg6: memref<32x96xf32, #tpu.memory_space<vmem>>, %arg7: memref<1x96xf32, #tpu.memory_space<vmem>>, %arg8: memref<32x32xf32, #tpu.memory_space<vmem>>, %arg9: memref<1x32xf32, #tpu.memory_space<vmem>>, %arg10: memref<32x128xf32, #tpu.memory_space<vmem>>, %arg11: memref<1x128xf32, #tpu.memory_space<vmem>>, %arg12: memref<128x32xf32, #tpu.memory_space<vmem>>, %arg13: memref<1x32xf32, #tpu.memory_space<vmem>>, %arg14: memref<1x32xf32, #tpu.memory_space<vmem>>, %arg15: memref<1x32xf32, #tpu.memory_space<vmem>>, %arg16: memref<1x32xf32, #tpu.memory_space<vmem>>, %arg17: memref<1x32xf32, #tpu.memory_space<vmem>>, %arg18: memref<32x96xf32, #tpu.memory_space<vmem>>, %arg19: memref<1x96xf32, #tpu.memory_space<vmem>>, %arg20: memref<32x32xf32, #tpu.memory_space<vmem>>, %arg21: memref<1x32xf32, #tpu.memory_space<vmem>>, %arg22: memref<32x128xf32, #tpu.memory_space<vmem>>, %arg23: memref<1x128xf32, #tpu.memory_space<vmem>>, %arg24: memref<128x32xf32, #tpu.memory_space<vmem>>, %arg25: memref<1x32xf32, #tpu.memory_space<vmem>>, %arg26: memref<1x32xf32, #tpu.memory_space<vmem>>, %arg27: memref<1x32xf32, #tpu.memory_space<vmem>>, %arg28: memref<32x256xf32, #tpu.memory_space<vmem>>, %arg29: memref<16x256xf32, #tpu.memory_space<vmem>>) attributes {dimension_semantics = [], scalar_prefetch = 0 : i64, scratch_operands = 0 : i64, tpu.core_type = #tpu.core_type<tc>} {
    %c0 = arith.constant 0 : index
    %c0_0 = arith.constant 0 : index
    %0 = vector.load %arg0[%c0, %c0_0] : memref<16x32xf32, #tpu.memory_space<vmem>>, vector<16x32xf32>
    %c0_1 = arith.constant 0 : index
    %c0_2 = arith.constant 0 : index
    %1 = vector.load %arg1[%c0_1, %c0_2] : memref<2x8xf32, #tpu.memory_space<vmem>>, vector<2x8xf32>
    %2 = tpu.iota {dimensions = array<i32: 0>} : vector<8x8xi32>
    %3 = tpu.iota {dimensions = array<i32: 1>} : vector<8x8xi32>
    %4 = arith.cmpi sge, %2, %3 : vector<8x8xi32>
    %5 = vector.extract_strided_slice %1 {offsets = [0, 0], sizes = [1, 8], strides = [1, 1]} : vector<2x8xf32> to vector<1x8xf32>
    %cst = arith.constant -1.000000e+09 : f32
    %6 = vector.shape_cast %5 : vector<1x8xf32> to vector<1x8xf32>
    %7 = vector.broadcast %6 : vector<1x8xf32> to vector<8x8xf32>
    %8 = vector.broadcast %cst : f32 to vector<8x8xf32>
    %9 = arith.select %4, %7, %8 : vector<8x8xi1>, vector<8x8xf32>
    %10 = vector.extract_strided_slice %1 {offsets = [1, 0], sizes = [1, 8], strides = [1, 1]} : vector<2x8xf32> to vector<1x8xf32>
    %cst_3 = arith.constant -1.000000e+09 : f32
    %11 = vector.shape_cast %10 : vector<1x8xf32> to vector<1x8xf32>
    %12 = vector.broadcast %11 : vector<1x8xf32> to vector<8x8xf32>
    %13 = vector.broadcast %cst_3 : f32 to vector<8x8xf32>
    %14 = arith.select %4, %12, %13 : vector<8x8xi1>, vector<8x8xf32>
    %c0_4 = arith.constant 0 : index
    %c0_5 = arith.constant 0 : index
    %15 = vector.load %arg2[%c0_4, %c0_5] : memref<1x32xf32, #tpu.memory_space<vmem>>, vector<1x32xf32>
    %c0_6 = arith.constant 0 : index
    %c0_7 = arith.constant 0 : index
    %16 = vector.load %arg3[%c0_6, %c0_7] : memref<1x32xf32, #tpu.memory_space<vmem>>, vector<1x32xf32>
    %cst_8 = arith.constant dense<0.000000e+00> : vector<16xf32>
    %17 = vector.multi_reduction <add>, %0, %cst_8 [1] : vector<16x32xf32> to vector<16xf32>
    %18 = vector.shape_cast %17 : vector<16xf32> to vector<16x1xf32>
    %cst_9 = arith.constant 3.200000e+01 : f32
    %19 = vector.broadcast %cst_9 : f32 to vector<16x1xf32>
    %20 = arith.divf %18, %19 : vector<16x1xf32>
    %21 = vector.broadcast %20 : vector<16x1xf32> to vector<16x32xf32>
    %22 = arith.subf %0, %21 : vector<16x32xf32>
    %23 = arith.mulf %22, %22 : vector<16x32xf32>
    %cst_10 = arith.constant dense<0.000000e+00> : vector<16xf32>
    %24 = vector.multi_reduction <add>, %23, %cst_10 [1] : vector<16x32xf32> to vector<16xf32>
    %25 = vector.shape_cast %24 : vector<16xf32> to vector<16x1xf32>
    %cst_11 = arith.constant 3.200000e+01 : f32
    %26 = vector.broadcast %cst_11 : f32 to vector<16x1xf32>
    %27 = arith.divf %25, %26 : vector<16x1xf32>
    %28 = vector.broadcast %20 : vector<16x1xf32> to vector<16x32xf32>
    %29 = arith.subf %0, %28 : vector<16x32xf32>
    %cst_12 = arith.constant 9.99999974E-6 : f32
    %30 = vector.broadcast %cst_12 : f32 to vector<16x1xf32>
    %31 = arith.addf %27, %30 : vector<16x1xf32>
    %32 = math.rsqrt %31 : vector<16x1xf32>
    %33 = vector.broadcast %32 : vector<16x1xf32> to vector<16x32xf32>
    %34 = arith.mulf %29, %33 : vector<16x32xf32>
    %35 = vector.broadcast %15 : vector<1x32xf32> to vector<16x32xf32>
    %36 = arith.mulf %34, %35 : vector<16x32xf32>
    %37 = vector.broadcast %16 : vector<1x32xf32> to vector<16x32xf32>
    %38 = arith.addf %36, %37 : vector<16x32xf32>
    %c0_13 = arith.constant 0 : index
    %c0_14 = arith.constant 0 : index
    %39 = vector.load %arg6[%c0_13, %c0_14] : memref<32x96xf32, #tpu.memory_space<vmem>>, vector<32x96xf32>
    %cst_15 = arith.constant dense<0.000000e+00> : vector<16x96xf32>
    %40 = tpu.matmul %38, %39, %cst_15 {dimension_numbers = #tpu.dot_dimension_numbers<[1], [0], [0], [1], [0, 0, 1, 1], [], []>} : vector<16x32xf32>, vector<32x96xf32>, vector<16x96xf32> -> vector<16x96xf32>
    %c0_16 = arith.constant 0 : index
    %c0_17 = arith.constant 0 : index
    %41 = vector.load %arg7[%c0_16, %c0_17] : memref<1x96xf32, #tpu.memory_space<vmem>>, vector<1x96xf32>
    %42 = vector.broadcast %41 : vector<1x96xf32> to vector<16x96xf32>
    %43 = arith.addf %40, %42 : vector<16x96xf32>
    %44 = vector.extract_strided_slice %43 {offsets = [0, 0], sizes = [8, 8], strides = [1, 1]} : vector<16x96xf32> to vector<8x8xf32>
    %45 = vector.extract_strided_slice %43 {offsets = [0, 32], sizes = [8, 8], strides = [1, 1]} : vector<16x96xf32> to vector<8x8xf32>
    %46 = vector.extract_strided_slice %43 {offsets = [0, 64], sizes = [8, 8], strides = [1, 1]} : vector<16x96xf32> to vector<8x8xf32>
    %cst_18 = arith.constant dense<0.000000e+00> : vector<8x8xf32>
    %47 = tpu.matmul %44, %45, %cst_18 {dimension_numbers = #tpu.dot_dimension_numbers<[1], [1], [0], [0], [0, 0, 1, 0], [], []>} : vector<8x8xf32>, vector<8x8xf32>, vector<8x8xf32> -> vector<8x8xf32>
    %48 = arith.addf %47, %9 : vector<8x8xf32>
    %cst_19 = arith.constant dense<0xFF800000> : vector<8xf32>
    %49 = vector.multi_reduction <maximumf>, %48, %cst_19 [1] : vector<8x8xf32> to vector<8xf32>
    %50 = vector.shape_cast %49 : vector<8xf32> to vector<8x1xf32>
    %51 = vector.broadcast %50 : vector<8x1xf32> to vector<8x8xf32>
    %52 = arith.subf %48, %51 : vector<8x8xf32>
    %53 = math.exp %52 : vector<8x8xf32>
    %cst_20 = arith.constant dense<0.000000e+00> : vector<8x8xf32>
    %54 = tpu.matmul %53, %46, %cst_20 {dimension_numbers = #tpu.dot_dimension_numbers<[1], [0], [0], [1], [0, 0, 1, 1], [], []>} : vector<8x8xf32>, vector<8x8xf32>, vector<8x8xf32> -> vector<8x8xf32>
    %cst_21 = arith.constant dense<0.000000e+00> : vector<8xf32>
    %55 = vector.multi_reduction <add>, %53, %cst_21 [1] : vector<8x8xf32> to vector<8xf32>
    %56 = vector.shape_cast %55 : vector<8xf32> to vector<8x1xf32>
    %57 = vector.extract_strided_slice %43 {offsets = [0, 8], sizes = [8, 8], strides = [1, 1]} : vector<16x96xf32> to vector<8x8xf32>
    %58 = vector.extract_strided_slice %43 {offsets = [0, 40], sizes = [8, 8], strides = [1, 1]} : vector<16x96xf32> to vector<8x8xf32>
    %59 = vector.extract_strided_slice %43 {offsets = [0, 72], sizes = [8, 8], strides = [1, 1]} : vector<16x96xf32> to vector<8x8xf32>
    %cst_22 = arith.constant dense<0.000000e+00> : vector<8x8xf32>
    %60 = tpu.matmul %57, %58, %cst_22 {dimension_numbers = #tpu.dot_dimension_numbers<[1], [1], [0], [0], [0, 0, 1, 0], [], []>} : vector<8x8xf32>, vector<8x8xf32>, vector<8x8xf32> -> vector<8x8xf32>
    %61 = arith.addf %60, %9 : vector<8x8xf32>
    %cst_23 = arith.constant dense<0xFF800000> : vector<8xf32>
    %62 = vector.multi_reduction <maximumf>, %61, %cst_23 [1] : vector<8x8xf32> to vector<8xf32>
    %63 = vector.shape_cast %62 : vector<8xf32> to vector<8x1xf32>
    %64 = vector.broadcast %63 : vector<8x1xf32> to vector<8x8xf32>
    %65 = arith.subf %61, %64 : vector<8x8xf32>
    %66 = math.exp %65 : vector<8x8xf32>
    %cst_24 = arith.constant dense<0.000000e+00> : vector<8x8xf32>
    %67 = tpu.matmul %66, %59, %cst_24 {dimension_numbers = #tpu.dot_dimension_numbers<[1], [0], [0], [1], [0, 0, 1, 1], [], []>} : vector<8x8xf32>, vector<8x8xf32>, vector<8x8xf32> -> vector<8x8xf32>
    %cst_25 = arith.constant dense<0.000000e+00> : vector<8xf32>
    %68 = vector.multi_reduction <add>, %66, %cst_25 [1] : vector<8x8xf32> to vector<8xf32>
    %69 = vector.shape_cast %68 : vector<8xf32> to vector<8x1xf32>
    %70 = vector.extract_strided_slice %43 {offsets = [0, 16], sizes = [8, 8], strides = [1, 1]} : vector<16x96xf32> to vector<8x8xf32>
    %71 = vector.extract_strided_slice %43 {offsets = [0, 48], sizes = [8, 8], strides = [1, 1]} : vector<16x96xf32> to vector<8x8xf32>
    %72 = vector.extract_strided_slice %43 {offsets = [0, 80], sizes = [8, 8], strides = [1, 1]} : vector<16x96xf32> to vector<8x8xf32>
    %cst_26 = arith.constant dense<0.000000e+00> : vector<8x8xf32>
    %73 = tpu.matmul %70, %71, %cst_26 {dimension_numbers = #tpu.dot_dimension_numbers<[1], [1], [0], [0], [0, 0, 1, 0], [], []>} : vector<8x8xf32>, vector<8x8xf32>, vector<8x8xf32> -> vector<8x8xf32>
    %74 = arith.addf %73, %9 : vector<8x8xf32>
    %cst_27 = arith.constant dense<0xFF800000> : vector<8xf32>
    %75 = vector.multi_reduction <maximumf>, %74, %cst_27 [1] : vector<8x8xf32> to vector<8xf32>
    %76 = vector.shape_cast %75 : vector<8xf32> to vector<8x1xf32>
    %77 = vector.broadcast %76 : vector<8x1xf32> to vector<8x8xf32>
    %78 = arith.subf %74, %77 : vector<8x8xf32>
    %79 = math.exp %78 : vector<8x8xf32>
    %cst_28 = arith.constant dense<0.000000e+00> : vector<8x8xf32>
    %80 = tpu.matmul %79, %72, %cst_28 {dimension_numbers = #tpu.dot_dimension_numbers<[1], [0], [0], [1], [0, 0, 1, 1], [], []>} : vector<8x8xf32>, vector<8x8xf32>, vector<8x8xf32> -> vector<8x8xf32>
    %cst_29 = arith.constant dense<0.000000e+00> : vector<8xf32>
    %81 = vector.multi_reduction <add>, %79, %cst_29 [1] : vector<8x8xf32> to vector<8xf32>
    %82 = vector.shape_cast %81 : vector<8xf32> to vector<8x1xf32>
    %83 = vector.extract_strided_slice %43 {offsets = [0, 24], sizes = [8, 8], strides = [1, 1]} : vector<16x96xf32> to vector<8x8xf32>
    %84 = vector.extract_strided_slice %43 {offsets = [0, 56], sizes = [8, 8], strides = [1, 1]} : vector<16x96xf32> to vector<8x8xf32>
    %85 = vector.extract_strided_slice %43 {offsets = [0, 88], sizes = [8, 8], strides = [1, 1]} : vector<16x96xf32> to vector<8x8xf32>
    %cst_30 = arith.constant dense<0.000000e+00> : vector<8x8xf32>
    %86 = tpu.matmul %83, %84, %cst_30 {dimension_numbers = #tpu.dot_dimension_numbers<[1], [1], [0], [0], [0, 0, 1, 0], [], []>} : vector<8x8xf32>, vector<8x8xf32>, vector<8x8xf32> -> vector<8x8xf32>
    %87 = arith.addf %86, %9 : vector<8x8xf32>
    %cst_31 = arith.constant dense<0xFF800000> : vector<8xf32>
    %88 = vector.multi_reduction <maximumf>, %87, %cst_31 [1] : vector<8x8xf32> to vector<8xf32>
    %89 = vector.shape_cast %88 : vector<8xf32> to vector<8x1xf32>
    %90 = vector.broadcast %89 : vector<8x1xf32> to vector<8x8xf32>
    %91 = arith.subf %87, %90 : vector<8x8xf32>
    %92 = math.exp %91 : vector<8x8xf32>
    %cst_32 = arith.constant dense<0.000000e+00> : vector<8x8xf32>
    %93 = tpu.matmul %92, %85, %cst_32 {dimension_numbers = #tpu.dot_dimension_numbers<[1], [0], [0], [1], [0, 0, 1, 1], [], []>} : vector<8x8xf32>, vector<8x8xf32>, vector<8x8xf32> -> vector<8x8xf32>
    %cst_33 = arith.constant dense<0.000000e+00> : vector<8xf32>
    %94 = vector.multi_reduction <add>, %92, %cst_33 [1] : vector<8x8xf32> to vector<8xf32>
    %95 = vector.shape_cast %94 : vector<8xf32> to vector<8x1xf32>
    %96 = tpu.concatenate %56, %69, %82, %95 in 1 : vector<8x1xf32>, vector<8x1xf32>, vector<8x1xf32>, vector<8x1xf32> -> vector<8x4xf32>
    %97 = tpu.reciprocal %96 {approx = true} : vector<8x4xf32> -> vector<8x4xf32>
    %98 = vector.extract_strided_slice %97 {offsets = [0, 0], sizes = [8, 1], strides = [1, 1]} : vector<8x4xf32> to vector<8x1xf32>
    %99 = vector.broadcast %98 : vector<8x1xf32> to vector<8x8xf32>
    %100 = arith.mulf %54, %99 : vector<8x8xf32>
    %101 = vector.extract_strided_slice %97 {offsets = [0, 1], sizes = [8, 1], strides = [1, 1]} : vector<8x4xf32> to vector<8x1xf32>
    %102 = vector.broadcast %101 : vector<8x1xf32> to vector<8x8xf32>
    %103 = arith.mulf %67, %102 : vector<8x8xf32>
    %104 = vector.extract_strided_slice %97 {offsets = [0, 2], sizes = [8, 1], strides = [1, 1]} : vector<8x4xf32> to vector<8x1xf32>
    %105 = vector.broadcast %104 : vector<8x1xf32> to vector<8x8xf32>
    %106 = arith.mulf %80, %105 : vector<8x8xf32>
    %107 = vector.extract_strided_slice %97 {offsets = [0, 3], sizes = [8, 1], strides = [1, 1]} : vector<8x4xf32> to vector<8x1xf32>
    %108 = vector.broadcast %107 : vector<8x1xf32> to vector<8x8xf32>
    %109 = arith.mulf %93, %108 : vector<8x8xf32>
    %110 = tpu.concatenate %100, %103, %106, %109 in 1 : vector<8x8xf32>, vector<8x8xf32>, vector<8x8xf32>, vector<8x8xf32> -> vector<8x32xf32>
    %111 = vector.extract_strided_slice %43 {offsets = [8, 0], sizes = [8, 8], strides = [1, 1]} : vector<16x96xf32> to vector<8x8xf32>
    %112 = vector.extract_strided_slice %43 {offsets = [8, 32], sizes = [8, 8], strides = [1, 1]} : vector<16x96xf32> to vector<8x8xf32>
    %113 = vector.extract_strided_slice %43 {offsets = [8, 64], sizes = [8, 8], strides = [1, 1]} : vector<16x96xf32> to vector<8x8xf32>
    %cst_34 = arith.constant dense<0.000000e+00> : vector<8x8xf32>
    %114 = tpu.matmul %111, %112, %cst_34 {dimension_numbers = #tpu.dot_dimension_numbers<[1], [1], [0], [0], [0, 0, 1, 0], [], []>} : vector<8x8xf32>, vector<8x8xf32>, vector<8x8xf32> -> vector<8x8xf32>
    %115 = arith.addf %114, %14 : vector<8x8xf32>
    %cst_35 = arith.constant dense<0xFF800000> : vector<8xf32>
    %116 = vector.multi_reduction <maximumf>, %115, %cst_35 [1] : vector<8x8xf32> to vector<8xf32>
    %117 = vector.shape_cast %116 : vector<8xf32> to vector<8x1xf32>
    %118 = vector.broadcast %117 : vector<8x1xf32> to vector<8x8xf32>
    %119 = arith.subf %115, %118 : vector<8x8xf32>
    %120 = math.exp %119 : vector<8x8xf32>
    %cst_36 = arith.constant dense<0.000000e+00> : vector<8x8xf32>
    %121 = tpu.matmul %120, %113, %cst_36 {dimension_numbers = #tpu.dot_dimension_numbers<[1], [0], [0], [1], [0, 0, 1, 1], [], []>} : vector<8x8xf32>, vector<8x8xf32>, vector<8x8xf32> -> vector<8x8xf32>
    %cst_37 = arith.constant dense<0.000000e+00> : vector<8xf32>
    %122 = vector.multi_reduction <add>, %120, %cst_37 [1] : vector<8x8xf32> to vector<8xf32>
    %123 = vector.shape_cast %122 : vector<8xf32> to vector<8x1xf32>
    %124 = vector.extract_strided_slice %43 {offsets = [8, 8], sizes = [8, 8], strides = [1, 1]} : vector<16x96xf32> to vector<8x8xf32>
    %125 = vector.extract_strided_slice %43 {offsets = [8, 40], sizes = [8, 8], strides = [1, 1]} : vector<16x96xf32> to vector<8x8xf32>
    %126 = vector.extract_strided_slice %43 {offsets = [8, 72], sizes = [8, 8], strides = [1, 1]} : vector<16x96xf32> to vector<8x8xf32>
    %cst_38 = arith.constant dense<0.000000e+00> : vector<8x8xf32>
    %127 = tpu.matmul %124, %125, %cst_38 {dimension_numbers = #tpu.dot_dimension_numbers<[1], [1], [0], [0], [0, 0, 1, 0], [], []>} : vector<8x8xf32>, vector<8x8xf32>, vector<8x8xf32> -> vector<8x8xf32>
    %128 = arith.addf %127, %14 : vector<8x8xf32>
    %cst_39 = arith.constant dense<0xFF800000> : vector<8xf32>
    %129 = vector.multi_reduction <maximumf>, %128, %cst_39 [1] : vector<8x8xf32> to vector<8xf32>
    %130 = vector.shape_cast %129 : vector<8xf32> to vector<8x1xf32>
    %131 = vector.broadcast %130 : vector<8x1xf32> to vector<8x8xf32>
    %132 = arith.subf %128, %131 : vector<8x8xf32>
    %133 = math.exp %132 : vector<8x8xf32>
    %cst_40 = arith.constant dense<0.000000e+00> : vector<8x8xf32>
    %134 = tpu.matmul %133, %126, %cst_40 {dimension_numbers = #tpu.dot_dimension_numbers<[1], [0], [0], [1], [0, 0, 1, 1], [], []>} : vector<8x8xf32>, vector<8x8xf32>, vector<8x8xf32> -> vector<8x8xf32>
    %cst_41 = arith.constant dense<0.000000e+00> : vector<8xf32>
    %135 = vector.multi_reduction <add>, %133, %cst_41 [1] : vector<8x8xf32> to vector<8xf32>
    %136 = vector.shape_cast %135 : vector<8xf32> to vector<8x1xf32>
    %137 = vector.extract_strided_slice %43 {offsets = [8, 16], sizes = [8, 8], strides = [1, 1]} : vector<16x96xf32> to vector<8x8xf32>
    %138 = vector.extract_strided_slice %43 {offsets = [8, 48], sizes = [8, 8], strides = [1, 1]} : vector<16x96xf32> to vector<8x8xf32>
    %139 = vector.extract_strided_slice %43 {offsets = [8, 80], sizes = [8, 8], strides = [1, 1]} : vector<16x96xf32> to vector<8x8xf32>
    %cst_42 = arith.constant dense<0.000000e+00> : vector<8x8xf32>
    %140 = tpu.matmul %137, %138, %cst_42 {dimension_numbers = #tpu.dot_dimension_numbers<[1], [1], [0], [0], [0, 0, 1, 0], [], []>} : vector<8x8xf32>, vector<8x8xf32>, vector<8x8xf32> -> vector<8x8xf32>
    %141 = arith.addf %140, %14 : vector<8x8xf32>
    %cst_43 = arith.constant dense<0xFF800000> : vector<8xf32>
    %142 = vector.multi_reduction <maximumf>, %141, %cst_43 [1] : vector<8x8xf32> to vector<8xf32>
    %143 = vector.shape_cast %142 : vector<8xf32> to vector<8x1xf32>
    %144 = vector.broadcast %143 : vector<8x1xf32> to vector<8x8xf32>
    %145 = arith.subf %141, %144 : vector<8x8xf32>
    %146 = math.exp %145 : vector<8x8xf32>
    %cst_44 = arith.constant dense<0.000000e+00> : vector<8x8xf32>
    %147 = tpu.matmul %146, %139, %cst_44 {dimension_numbers = #tpu.dot_dimension_numbers<[1], [0], [0], [1], [0, 0, 1, 1], [], []>} : vector<8x8xf32>, vector<8x8xf32>, vector<8x8xf32> -> vector<8x8xf32>
    %cst_45 = arith.constant dense<0.000000e+00> : vector<8xf32>
    %148 = vector.multi_reduction <add>, %146, %cst_45 [1] : vector<8x8xf32> to vector<8xf32>
    %149 = vector.shape_cast %148 : vector<8xf32> to vector<8x1xf32>
    %150 = vector.extract_strided_slice %43 {offsets = [8, 24], sizes = [8, 8], strides = [1, 1]} : vector<16x96xf32> to vector<8x8xf32>
    %151 = vector.extract_strided_slice %43 {offsets = [8, 56], sizes = [8, 8], strides = [1, 1]} : vector<16x96xf32> to vector<8x8xf32>
    %152 = vector.extract_strided_slice %43 {offsets = [8, 88], sizes = [8, 8], strides = [1, 1]} : vector<16x96xf32> to vector<8x8xf32>
    %cst_46 = arith.constant dense<0.000000e+00> : vector<8x8xf32>
    %153 = tpu.matmul %150, %151, %cst_46 {dimension_numbers = #tpu.dot_dimension_numbers<[1], [1], [0], [0], [0, 0, 1, 0], [], []>} : vector<8x8xf32>, vector<8x8xf32>, vector<8x8xf32> -> vector<8x8xf32>
    %154 = arith.addf %153, %14 : vector<8x8xf32>
    %cst_47 = arith.constant dense<0xFF800000> : vector<8xf32>
    %155 = vector.multi_reduction <maximumf>, %154, %cst_47 [1] : vector<8x8xf32> to vector<8xf32>
    %156 = vector.shape_cast %155 : vector<8xf32> to vector<8x1xf32>
    %157 = vector.broadcast %156 : vector<8x1xf32> to vector<8x8xf32>
    %158 = arith.subf %154, %157 : vector<8x8xf32>
    %159 = math.exp %158 : vector<8x8xf32>
    %cst_48 = arith.constant dense<0.000000e+00> : vector<8x8xf32>
    %160 = tpu.matmul %159, %152, %cst_48 {dimension_numbers = #tpu.dot_dimension_numbers<[1], [0], [0], [1], [0, 0, 1, 1], [], []>} : vector<8x8xf32>, vector<8x8xf32>, vector<8x8xf32> -> vector<8x8xf32>
    %cst_49 = arith.constant dense<0.000000e+00> : vector<8xf32>
    %161 = vector.multi_reduction <add>, %159, %cst_49 [1] : vector<8x8xf32> to vector<8xf32>
    %162 = vector.shape_cast %161 : vector<8xf32> to vector<8x1xf32>
    %163 = tpu.concatenate %123, %136, %149, %162 in 1 : vector<8x1xf32>, vector<8x1xf32>, vector<8x1xf32>, vector<8x1xf32> -> vector<8x4xf32>
    %164 = tpu.reciprocal %163 {approx = true} : vector<8x4xf32> -> vector<8x4xf32>
    %165 = vector.extract_strided_slice %164 {offsets = [0, 0], sizes = [8, 1], strides = [1, 1]} : vector<8x4xf32> to vector<8x1xf32>
    %166 = vector.broadcast %165 : vector<8x1xf32> to vector<8x8xf32>
    %167 = arith.mulf %121, %166 : vector<8x8xf32>
    %168 = vector.extract_strided_slice %164 {offsets = [0, 1], sizes = [8, 1], strides = [1, 1]} : vector<8x4xf32> to vector<8x1xf32>
    %169 = vector.broadcast %168 : vector<8x1xf32> to vector<8x8xf32>
    %170 = arith.mulf %134, %169 : vector<8x8xf32>
    %171 = vector.extract_strided_slice %164 {offsets = [0, 2], sizes = [8, 1], strides = [1, 1]} : vector<8x4xf32> to vector<8x1xf32>
    %172 = vector.broadcast %171 : vector<8x1xf32> to vector<8x8xf32>
    %173 = arith.mulf %147, %172 : vector<8x8xf32>
    %174 = vector.extract_strided_slice %164 {offsets = [0, 3], sizes = [8, 1], strides = [1, 1]} : vector<8x4xf32> to vector<8x1xf32>
    %175 = vector.broadcast %174 : vector<8x1xf32> to vector<8x8xf32>
    %176 = arith.mulf %160, %175 : vector<8x8xf32>
    %177 = tpu.concatenate %167, %170, %173, %176 in 1 : vector<8x8xf32>, vector<8x8xf32>, vector<8x8xf32>, vector<8x8xf32> -> vector<8x32xf32>
    %178 = tpu.concatenate %110, %177 in 0 : vector<8x32xf32>, vector<8x32xf32> -> vector<16x32xf32>
    %c0_50 = arith.constant 0 : index
    %c0_51 = arith.constant 0 : index
    %179 = vector.load %arg8[%c0_50, %c0_51] : memref<32x32xf32, #tpu.memory_space<vmem>>, vector<32x32xf32>
    %cst_52 = arith.constant dense<0.000000e+00> : vector<16x32xf32>
    %180 = tpu.matmul %178, %179, %cst_52 {dimension_numbers = #tpu.dot_dimension_numbers<[1], [0], [0], [1], [0, 0, 1, 1], [], []>} : vector<16x32xf32>, vector<32x32xf32>, vector<16x32xf32> -> vector<16x32xf32>
    %c0_53 = arith.constant 0 : index
    %c0_54 = arith.constant 0 : index
    %181 = vector.load %arg9[%c0_53, %c0_54] : memref<1x32xf32, #tpu.memory_space<vmem>>, vector<1x32xf32>
    %182 = vector.broadcast %181 : vector<1x32xf32> to vector<16x32xf32>
    %183 = arith.addf %180, %182 : vector<16x32xf32>
    %184 = arith.addf %0, %183 : vector<16x32xf32>
    %c0_55 = arith.constant 0 : index
    %c0_56 = arith.constant 0 : index
    %185 = vector.load %arg4[%c0_55, %c0_56] : memref<1x32xf32, #tpu.memory_space<vmem>>, vector<1x32xf32>
    %c0_57 = arith.constant 0 : index
    %c0_58 = arith.constant 0 : index
    %186 = vector.load %arg5[%c0_57, %c0_58] : memref<1x32xf32, #tpu.memory_space<vmem>>, vector<1x32xf32>
    %cst_59 = arith.constant dense<0.000000e+00> : vector<16xf32>
    %187 = vector.multi_reduction <add>, %184, %cst_59 [1] : vector<16x32xf32> to vector<16xf32>
    %188 = vector.shape_cast %187 : vector<16xf32> to vector<16x1xf32>
    %cst_60 = arith.constant 3.200000e+01 : f32
    %189 = vector.broadcast %cst_60 : f32 to vector<16x1xf32>
    %190 = arith.divf %188, %189 : vector<16x1xf32>
    %191 = vector.broadcast %190 : vector<16x1xf32> to vector<16x32xf32>
    %192 = arith.subf %184, %191 : vector<16x32xf32>
    %193 = arith.mulf %192, %192 : vector<16x32xf32>
    %cst_61 = arith.constant dense<0.000000e+00> : vector<16xf32>
    %194 = vector.multi_reduction <add>, %193, %cst_61 [1] : vector<16x32xf32> to vector<16xf32>
    %195 = vector.shape_cast %194 : vector<16xf32> to vector<16x1xf32>
    %cst_62 = arith.constant 3.200000e+01 : f32
    %196 = vector.broadcast %cst_62 : f32 to vector<16x1xf32>
    %197 = arith.divf %195, %196 : vector<16x1xf32>
    %198 = vector.broadcast %190 : vector<16x1xf32> to vector<16x32xf32>
    %199 = arith.subf %184, %198 : vector<16x32xf32>
    %cst_63 = arith.constant 9.99999974E-6 : f32
    %200 = vector.broadcast %cst_63 : f32 to vector<16x1xf32>
    %201 = arith.addf %197, %200 : vector<16x1xf32>
    %202 = math.rsqrt %201 : vector<16x1xf32>
    %203 = vector.broadcast %202 : vector<16x1xf32> to vector<16x32xf32>
    %204 = arith.mulf %199, %203 : vector<16x32xf32>
    %205 = vector.broadcast %185 : vector<1x32xf32> to vector<16x32xf32>
    %206 = arith.mulf %204, %205 : vector<16x32xf32>
    %207 = vector.broadcast %186 : vector<1x32xf32> to vector<16x32xf32>
    %208 = arith.addf %206, %207 : vector<16x32xf32>
    %c0_64 = arith.constant 0 : index
    %c0_65 = arith.constant 0 : index
    %209 = vector.load %arg10[%c0_64, %c0_65] : memref<32x128xf32, #tpu.memory_space<vmem>>, vector<32x128xf32>
    %cst_66 = arith.constant dense<0.000000e+00> : vector<16x128xf32>
    %210 = tpu.matmul %208, %209, %cst_66 {dimension_numbers = #tpu.dot_dimension_numbers<[1], [0], [0], [1], [0, 0, 1, 1], [], []>} : vector<16x32xf32>, vector<32x128xf32>, vector<16x128xf32> -> vector<16x128xf32>
    %c0_67 = arith.constant 0 : index
    %c0_68 = arith.constant 0 : index
    %211 = vector.load %arg11[%c0_67, %c0_68] : memref<1x128xf32, #tpu.memory_space<vmem>>, vector<1x128xf32>
    %212 = vector.broadcast %211 : vector<1x128xf32> to vector<16x128xf32>
    %213 = arith.addf %210, %212 : vector<16x128xf32>
    %cst_69 = arith.constant 5.000000e-01 : f32
    %214 = vector.broadcast %cst_69 : f32 to vector<16x128xf32>
    %215 = arith.mulf %214, %213 : vector<16x128xf32>
    %cst_70 = arith.constant 4.471500e-02 : f32
    %216 = vector.broadcast %cst_70 : f32 to vector<16x128xf32>
    %217 = arith.mulf %216, %213 : vector<16x128xf32>
    %218 = arith.mulf %217, %213 : vector<16x128xf32>
    %219 = arith.mulf %218, %213 : vector<16x128xf32>
    %220 = arith.addf %213, %219 : vector<16x128xf32>
    %cst_71 = arith.constant 0.797884583 : f32
    %221 = vector.broadcast %cst_71 : f32 to vector<16x128xf32>
    %222 = arith.mulf %221, %220 : vector<16x128xf32>
    %223 = math.tanh %222 : vector<16x128xf32>
    %cst_72 = arith.constant 1.000000e+00 : f32
    %224 = vector.broadcast %cst_72 : f32 to vector<16x128xf32>
    %225 = arith.addf %224, %223 : vector<16x128xf32>
    %226 = arith.mulf %215, %225 : vector<16x128xf32>
    %c0_73 = arith.constant 0 : index
    %c0_74 = arith.constant 0 : index
    %227 = vector.load %arg12[%c0_73, %c0_74] : memref<128x32xf32, #tpu.memory_space<vmem>>, vector<128x32xf32>
    %cst_75 = arith.constant dense<0.000000e+00> : vector<16x32xf32>
    %228 = tpu.matmul %226, %227, %cst_75 {dimension_numbers = #tpu.dot_dimension_numbers<[1], [0], [0], [1], [0, 0, 1, 1], [], []>} : vector<16x128xf32>, vector<128x32xf32>, vector<16x32xf32> -> vector<16x32xf32>
    %c0_76 = arith.constant 0 : index
    %c0_77 = arith.constant 0 : index
    %229 = vector.load %arg13[%c0_76, %c0_77] : memref<1x32xf32, #tpu.memory_space<vmem>>, vector<1x32xf32>
    %230 = vector.broadcast %229 : vector<1x32xf32> to vector<16x32xf32>
    %231 = arith.addf %228, %230 : vector<16x32xf32>
    %232 = arith.addf %184, %231 : vector<16x32xf32>
    %c0_78 = arith.constant 0 : index
    %c0_79 = arith.constant 0 : index
    %233 = vector.load %arg14[%c0_78, %c0_79] : memref<1x32xf32, #tpu.memory_space<vmem>>, vector<1x32xf32>
    %c0_80 = arith.constant 0 : index
    %c0_81 = arith.constant 0 : index
    %234 = vector.load %arg15[%c0_80, %c0_81] : memref<1x32xf32, #tpu.memory_space<vmem>>, vector<1x32xf32>
    %cst_82 = arith.constant dense<0.000000e+00> : vector<16xf32>
    %235 = vector.multi_reduction <add>, %232, %cst_82 [1] : vector<16x32xf32> to vector<16xf32>
    %236 = vector.shape_cast %235 : vector<16xf32> to vector<16x1xf32>
    %cst_83 = arith.constant 3.200000e+01 : f32
    %237 = vector.broadcast %cst_83 : f32 to vector<16x1xf32>
    %238 = arith.divf %236, %237 : vector<16x1xf32>
    %239 = vector.broadcast %238 : vector<16x1xf32> to vector<16x32xf32>
    %240 = arith.subf %232, %239 : vector<16x32xf32>
    %241 = arith.mulf %240, %240 : vector<16x32xf32>
    %cst_84 = arith.constant dense<0.000000e+00> : vector<16xf32>
    %242 = vector.multi_reduction <add>, %241, %cst_84 [1] : vector<16x32xf32> to vector<16xf32>
    %243 = vector.shape_cast %242 : vector<16xf32> to vector<16x1xf32>
    %cst_85 = arith.constant 3.200000e+01 : f32
    %244 = vector.broadcast %cst_85 : f32 to vector<16x1xf32>
    %245 = arith.divf %243, %244 : vector<16x1xf32>
    %246 = vector.broadcast %238 : vector<16x1xf32> to vector<16x32xf32>
    %247 = arith.subf %232, %246 : vector<16x32xf32>
    %cst_86 = arith.constant 9.99999974E-6 : f32
    %248 = vector.broadcast %cst_86 : f32 to vector<16x1xf32>
    %249 = arith.addf %245, %248 : vector<16x1xf32>
    %250 = math.rsqrt %249 : vector<16x1xf32>
    %251 = vector.broadcast %250 : vector<16x1xf32> to vector<16x32xf32>
    %252 = arith.mulf %247, %251 : vector<16x32xf32>
    %253 = vector.broadcast %233 : vector<1x32xf32> to vector<16x32xf32>
    %254 = arith.mulf %252, %253 : vector<16x32xf32>
    %255 = vector.broadcast %234 : vector<1x32xf32> to vector<16x32xf32>
    %256 = arith.addf %254, %255 : vector<16x32xf32>
    %c0_87 = arith.constant 0 : index
    %c0_88 = arith.constant 0 : index
    %257 = vector.load %arg18[%c0_87, %c0_88] : memref<32x96xf32, #tpu.memory_space<vmem>>, vector<32x96xf32>
    %cst_89 = arith.constant dense<0.000000e+00> : vector<16x96xf32>
    %258 = tpu.matmul %256, %257, %cst_89 {dimension_numbers = #tpu.dot_dimension_numbers<[1], [0], [0], [1], [0, 0, 1, 1], [], []>} : vector<16x32xf32>, vector<32x96xf32>, vector<16x96xf32> -> vector<16x96xf32>
    %c0_90 = arith.constant 0 : index
    %c0_91 = arith.constant 0 : index
    %259 = vector.load %arg19[%c0_90, %c0_91] : memref<1x96xf32, #tpu.memory_space<vmem>>, vector<1x96xf32>
    %260 = vector.broadcast %259 : vector<1x96xf32> to vector<16x96xf32>
    %261 = arith.addf %258, %260 : vector<16x96xf32>
    %262 = vector.extract_strided_slice %261 {offsets = [0, 0], sizes = [8, 8], strides = [1, 1]} : vector<16x96xf32> to vector<8x8xf32>
    %263 = vector.extract_strided_slice %261 {offsets = [0, 32], sizes = [8, 8], strides = [1, 1]} : vector<16x96xf32> to vector<8x8xf32>
    %264 = vector.extract_strided_slice %261 {offsets = [0, 64], sizes = [8, 8], strides = [1, 1]} : vector<16x96xf32> to vector<8x8xf32>
    %cst_92 = arith.constant dense<0.000000e+00> : vector<8x8xf32>
    %265 = tpu.matmul %262, %263, %cst_92 {dimension_numbers = #tpu.dot_dimension_numbers<[1], [1], [0], [0], [0, 0, 1, 0], [], []>} : vector<8x8xf32>, vector<8x8xf32>, vector<8x8xf32> -> vector<8x8xf32>
    %266 = arith.addf %265, %9 : vector<8x8xf32>
    %cst_93 = arith.constant dense<0xFF800000> : vector<8xf32>
    %267 = vector.multi_reduction <maximumf>, %266, %cst_93 [1] : vector<8x8xf32> to vector<8xf32>
    %268 = vector.shape_cast %267 : vector<8xf32> to vector<8x1xf32>
    %269 = vector.broadcast %268 : vector<8x1xf32> to vector<8x8xf32>
    %270 = arith.subf %266, %269 : vector<8x8xf32>
    %271 = math.exp %270 : vector<8x8xf32>
    %cst_94 = arith.constant dense<0.000000e+00> : vector<8x8xf32>
    %272 = tpu.matmul %271, %264, %cst_94 {dimension_numbers = #tpu.dot_dimension_numbers<[1], [0], [0], [1], [0, 0, 1, 1], [], []>} : vector<8x8xf32>, vector<8x8xf32>, vector<8x8xf32> -> vector<8x8xf32>
    %cst_95 = arith.constant dense<0.000000e+00> : vector<8xf32>
    %273 = vector.multi_reduction <add>, %271, %cst_95 [1] : vector<8x8xf32> to vector<8xf32>
    %274 = vector.shape_cast %273 : vector<8xf32> to vector<8x1xf32>
    %275 = vector.extract_strided_slice %261 {offsets = [0, 8], sizes = [8, 8], strides = [1, 1]} : vector<16x96xf32> to vector<8x8xf32>
    %276 = vector.extract_strided_slice %261 {offsets = [0, 40], sizes = [8, 8], strides = [1, 1]} : vector<16x96xf32> to vector<8x8xf32>
    %277 = vector.extract_strided_slice %261 {offsets = [0, 72], sizes = [8, 8], strides = [1, 1]} : vector<16x96xf32> to vector<8x8xf32>
    %cst_96 = arith.constant dense<0.000000e+00> : vector<8x8xf32>
    %278 = tpu.matmul %275, %276, %cst_96 {dimension_numbers = #tpu.dot_dimension_numbers<[1], [1], [0], [0], [0, 0, 1, 0], [], []>} : vector<8x8xf32>, vector<8x8xf32>, vector<8x8xf32> -> vector<8x8xf32>
    %279 = arith.addf %278, %9 : vector<8x8xf32>
    %cst_97 = arith.constant dense<0xFF800000> : vector<8xf32>
    %280 = vector.multi_reduction <maximumf>, %279, %cst_97 [1] : vector<8x8xf32> to vector<8xf32>
    %281 = vector.shape_cast %280 : vector<8xf32> to vector<8x1xf32>
    %282 = vector.broadcast %281 : vector<8x1xf32> to vector<8x8xf32>
    %283 = arith.subf %279, %282 : vector<8x8xf32>
    %284 = math.exp %283 : vector<8x8xf32>
    %cst_98 = arith.constant dense<0.000000e+00> : vector<8x8xf32>
    %285 = tpu.matmul %284, %277, %cst_98 {dimension_numbers = #tpu.dot_dimension_numbers<[1], [0], [0], [1], [0, 0, 1, 1], [], []>} : vector<8x8xf32>, vector<8x8xf32>, vector<8x8xf32> -> vector<8x8xf32>
    %cst_99 = arith.constant dense<0.000000e+00> : vector<8xf32>
    %286 = vector.multi_reduction <add>, %284, %cst_99 [1] : vector<8x8xf32> to vector<8xf32>
    %287 = vector.shape_cast %286 : vector<8xf32> to vector<8x1xf32>
    %288 = vector.extract_strided_slice %261 {offsets = [0, 16], sizes = [8, 8], strides = [1, 1]} : vector<16x96xf32> to vector<8x8xf32>
    %289 = vector.extract_strided_slice %261 {offsets = [0, 48], sizes = [8, 8], strides = [1, 1]} : vector<16x96xf32> to vector<8x8xf32>
    %290 = vector.extract_strided_slice %261 {offsets = [0, 80], sizes = [8, 8], strides = [1, 1]} : vector<16x96xf32> to vector<8x8xf32>
    %cst_100 = arith.constant dense<0.000000e+00> : vector<8x8xf32>
    %291 = tpu.matmul %288, %289, %cst_100 {dimension_numbers = #tpu.dot_dimension_numbers<[1], [1], [0], [0], [0, 0, 1, 0], [], []>} : vector<8x8xf32>, vector<8x8xf32>, vector<8x8xf32> -> vector<8x8xf32>
    %292 = arith.addf %291, %9 : vector<8x8xf32>
    %cst_101 = arith.constant dense<0xFF800000> : vector<8xf32>
    %293 = vector.multi_reduction <maximumf>, %292, %cst_101 [1] : vector<8x8xf32> to vector<8xf32>
    %294 = vector.shape_cast %293 : vector<8xf32> to vector<8x1xf32>
    %295 = vector.broadcast %294 : vector<8x1xf32> to vector<8x8xf32>
    %296 = arith.subf %292, %295 : vector<8x8xf32>
    %297 = math.exp %296 : vector<8x8xf32>
    %cst_102 = arith.constant dense<0.000000e+00> : vector<8x8xf32>
    %298 = tpu.matmul %297, %290, %cst_102 {dimension_numbers = #tpu.dot_dimension_numbers<[1], [0], [0], [1], [0, 0, 1, 1], [], []>} : vector<8x8xf32>, vector<8x8xf32>, vector<8x8xf32> -> vector<8x8xf32>
    %cst_103 = arith.constant dense<0.000000e+00> : vector<8xf32>
    %299 = vector.multi_reduction <add>, %297, %cst_103 [1] : vector<8x8xf32> to vector<8xf32>
    %300 = vector.shape_cast %299 : vector<8xf32> to vector<8x1xf32>
    %301 = vector.extract_strided_slice %261 {offsets = [0, 24], sizes = [8, 8], strides = [1, 1]} : vector<16x96xf32> to vector<8x8xf32>
    %302 = vector.extract_strided_slice %261 {offsets = [0, 56], sizes = [8, 8], strides = [1, 1]} : vector<16x96xf32> to vector<8x8xf32>
    %303 = vector.extract_strided_slice %261 {offsets = [0, 88], sizes = [8, 8], strides = [1, 1]} : vector<16x96xf32> to vector<8x8xf32>
    %cst_104 = arith.constant dense<0.000000e+00> : vector<8x8xf32>
    %304 = tpu.matmul %301, %302, %cst_104 {dimension_numbers = #tpu.dot_dimension_numbers<[1], [1], [0], [0], [0, 0, 1, 0], [], []>} : vector<8x8xf32>, vector<8x8xf32>, vector<8x8xf32> -> vector<8x8xf32>
    %305 = arith.addf %304, %9 : vector<8x8xf32>
    %cst_105 = arith.constant dense<0xFF800000> : vector<8xf32>
    %306 = vector.multi_reduction <maximumf>, %305, %cst_105 [1] : vector<8x8xf32> to vector<8xf32>
    %307 = vector.shape_cast %306 : vector<8xf32> to vector<8x1xf32>
    %308 = vector.broadcast %307 : vector<8x1xf32> to vector<8x8xf32>
    %309 = arith.subf %305, %308 : vector<8x8xf32>
    %310 = math.exp %309 : vector<8x8xf32>
    %cst_106 = arith.constant dense<0.000000e+00> : vector<8x8xf32>
    %311 = tpu.matmul %310, %303, %cst_106 {dimension_numbers = #tpu.dot_dimension_numbers<[1], [0], [0], [1], [0, 0, 1, 1], [], []>} : vector<8x8xf32>, vector<8x8xf32>, vector<8x8xf32> -> vector<8x8xf32>
    %cst_107 = arith.constant dense<0.000000e+00> : vector<8xf32>
    %312 = vector.multi_reduction <add>, %310, %cst_107 [1] : vector<8x8xf32> to vector<8xf32>
    %313 = vector.shape_cast %312 : vector<8xf32> to vector<8x1xf32>
    %314 = tpu.concatenate %274, %287, %300, %313 in 1 : vector<8x1xf32>, vector<8x1xf32>, vector<8x1xf32>, vector<8x1xf32> -> vector<8x4xf32>
    %315 = tpu.reciprocal %314 {approx = true} : vector<8x4xf32> -> vector<8x4xf32>
    %316 = vector.extract_strided_slice %315 {offsets = [0, 0], sizes = [8, 1], strides = [1, 1]} : vector<8x4xf32> to vector<8x1xf32>
    %317 = vector.broadcast %316 : vector<8x1xf32> to vector<8x8xf32>
    %318 = arith.mulf %272, %317 : vector<8x8xf32>
    %319 = vector.extract_strided_slice %315 {offsets = [0, 1], sizes = [8, 1], strides = [1, 1]} : vector<8x4xf32> to vector<8x1xf32>
    %320 = vector.broadcast %319 : vector<8x1xf32> to vector<8x8xf32>
    %321 = arith.mulf %285, %320 : vector<8x8xf32>
    %322 = vector.extract_strided_slice %315 {offsets = [0, 2], sizes = [8, 1], strides = [1, 1]} : vector<8x4xf32> to vector<8x1xf32>
    %323 = vector.broadcast %322 : vector<8x1xf32> to vector<8x8xf32>
    %324 = arith.mulf %298, %323 : vector<8x8xf32>
    %325 = vector.extract_strided_slice %315 {offsets = [0, 3], sizes = [8, 1], strides = [1, 1]} : vector<8x4xf32> to vector<8x1xf32>
    %326 = vector.broadcast %325 : vector<8x1xf32> to vector<8x8xf32>
    %327 = arith.mulf %311, %326 : vector<8x8xf32>
    %328 = tpu.concatenate %318, %321, %324, %327 in 1 : vector<8x8xf32>, vector<8x8xf32>, vector<8x8xf32>, vector<8x8xf32> -> vector<8x32xf32>
    %329 = vector.extract_strided_slice %261 {offsets = [8, 0], sizes = [8, 8], strides = [1, 1]} : vector<16x96xf32> to vector<8x8xf32>
    %330 = vector.extract_strided_slice %261 {offsets = [8, 32], sizes = [8, 8], strides = [1, 1]} : vector<16x96xf32> to vector<8x8xf32>
    %331 = vector.extract_strided_slice %261 {offsets = [8, 64], sizes = [8, 8], strides = [1, 1]} : vector<16x96xf32> to vector<8x8xf32>
    %cst_108 = arith.constant dense<0.000000e+00> : vector<8x8xf32>
    %332 = tpu.matmul %329, %330, %cst_108 {dimension_numbers = #tpu.dot_dimension_numbers<[1], [1], [0], [0], [0, 0, 1, 0], [], []>} : vector<8x8xf32>, vector<8x8xf32>, vector<8x8xf32> -> vector<8x8xf32>
    %333 = arith.addf %332, %14 : vector<8x8xf32>
    %cst_109 = arith.constant dense<0xFF800000> : vector<8xf32>
    %334 = vector.multi_reduction <maximumf>, %333, %cst_109 [1] : vector<8x8xf32> to vector<8xf32>
    %335 = vector.shape_cast %334 : vector<8xf32> to vector<8x1xf32>
    %336 = vector.broadcast %335 : vector<8x1xf32> to vector<8x8xf32>
    %337 = arith.subf %333, %336 : vector<8x8xf32>
    %338 = math.exp %337 : vector<8x8xf32>
    %cst_110 = arith.constant dense<0.000000e+00> : vector<8x8xf32>
    %339 = tpu.matmul %338, %331, %cst_110 {dimension_numbers = #tpu.dot_dimension_numbers<[1], [0], [0], [1], [0, 0, 1, 1], [], []>} : vector<8x8xf32>, vector<8x8xf32>, vector<8x8xf32> -> vector<8x8xf32>
    %cst_111 = arith.constant dense<0.000000e+00> : vector<8xf32>
    %340 = vector.multi_reduction <add>, %338, %cst_111 [1] : vector<8x8xf32> to vector<8xf32>
    %341 = vector.shape_cast %340 : vector<8xf32> to vector<8x1xf32>
    %342 = vector.extract_strided_slice %261 {offsets = [8, 8], sizes = [8, 8], strides = [1, 1]} : vector<16x96xf32> to vector<8x8xf32>
    %343 = vector.extract_strided_slice %261 {offsets = [8, 40], sizes = [8, 8], strides = [1, 1]} : vector<16x96xf32> to vector<8x8xf32>
    %344 = vector.extract_strided_slice %261 {offsets = [8, 72], sizes = [8, 8], strides = [1, 1]} : vector<16x96xf32> to vector<8x8xf32>
    %cst_112 = arith.constant dense<0.000000e+00> : vector<8x8xf32>
    %345 = tpu.matmul %342, %343, %cst_112 {dimension_numbers = #tpu.dot_dimension_numbers<[1], [1], [0], [0], [0, 0, 1, 0], [], []>} : vector<8x8xf32>, vector<8x8xf32>, vector<8x8xf32> -> vector<8x8xf32>
    %346 = arith.addf %345, %14 : vector<8x8xf32>
    %cst_113 = arith.constant dense<0xFF800000> : vector<8xf32>
    %347 = vector.multi_reduction <maximumf>, %346, %cst_113 [1] : vector<8x8xf32> to vector<8xf32>
    %348 = vector.shape_cast %347 : vector<8xf32> to vector<8x1xf32>
    %349 = vector.broadcast %348 : vector<8x1xf32> to vector<8x8xf32>
    %350 = arith.subf %346, %349 : vector<8x8xf32>
    %351 = math.exp %350 : vector<8x8xf32>
    %cst_114 = arith.constant dense<0.000000e+00> : vector<8x8xf32>
    %352 = tpu.matmul %351, %344, %cst_114 {dimension_numbers = #tpu.dot_dimension_numbers<[1], [0], [0], [1], [0, 0, 1, 1], [], []>} : vector<8x8xf32>, vector<8x8xf32>, vector<8x8xf32> -> vector<8x8xf32>
    %cst_115 = arith.constant dense<0.000000e+00> : vector<8xf32>
    %353 = vector.multi_reduction <add>, %351, %cst_115 [1] : vector<8x8xf32> to vector<8xf32>
    %354 = vector.shape_cast %353 : vector<8xf32> to vector<8x1xf32>
    %355 = vector.extract_strided_slice %261 {offsets = [8, 16], sizes = [8, 8], strides = [1, 1]} : vector<16x96xf32> to vector<8x8xf32>
    %356 = vector.extract_strided_slice %261 {offsets = [8, 48], sizes = [8, 8], strides = [1, 1]} : vector<16x96xf32> to vector<8x8xf32>
    %357 = vector.extract_strided_slice %261 {offsets = [8, 80], sizes = [8, 8], strides = [1, 1]} : vector<16x96xf32> to vector<8x8xf32>
    %cst_116 = arith.constant dense<0.000000e+00> : vector<8x8xf32>
    %358 = tpu.matmul %355, %356, %cst_116 {dimension_numbers = #tpu.dot_dimension_numbers<[1], [1], [0], [0], [0, 0, 1, 0], [], []>} : vector<8x8xf32>, vector<8x8xf32>, vector<8x8xf32> -> vector<8x8xf32>
    %359 = arith.addf %358, %14 : vector<8x8xf32>
    %cst_117 = arith.constant dense<0xFF800000> : vector<8xf32>
    %360 = vector.multi_reduction <maximumf>, %359, %cst_117 [1] : vector<8x8xf32> to vector<8xf32>
    %361 = vector.shape_cast %360 : vector<8xf32> to vector<8x1xf32>
    %362 = vector.broadcast %361 : vector<8x1xf32> to vector<8x8xf32>
    %363 = arith.subf %359, %362 : vector<8x8xf32>
    %364 = math.exp %363 : vector<8x8xf32>
    %cst_118 = arith.constant dense<0.000000e+00> : vector<8x8xf32>
    %365 = tpu.matmul %364, %357, %cst_118 {dimension_numbers = #tpu.dot_dimension_numbers<[1], [0], [0], [1], [0, 0, 1, 1], [], []>} : vector<8x8xf32>, vector<8x8xf32>, vector<8x8xf32> -> vector<8x8xf32>
    %cst_119 = arith.constant dense<0.000000e+00> : vector<8xf32>
    %366 = vector.multi_reduction <add>, %364, %cst_119 [1] : vector<8x8xf32> to vector<8xf32>
    %367 = vector.shape_cast %366 : vector<8xf32> to vector<8x1xf32>
    %368 = vector.extract_strided_slice %261 {offsets = [8, 24], sizes = [8, 8], strides = [1, 1]} : vector<16x96xf32> to vector<8x8xf32>
    %369 = vector.extract_strided_slice %261 {offsets = [8, 56], sizes = [8, 8], strides = [1, 1]} : vector<16x96xf32> to vector<8x8xf32>
    %370 = vector.extract_strided_slice %261 {offsets = [8, 88], sizes = [8, 8], strides = [1, 1]} : vector<16x96xf32> to vector<8x8xf32>
    %cst_120 = arith.constant dense<0.000000e+00> : vector<8x8xf32>
    %371 = tpu.matmul %368, %369, %cst_120 {dimension_numbers = #tpu.dot_dimension_numbers<[1], [1], [0], [0], [0, 0, 1, 0], [], []>} : vector<8x8xf32>, vector<8x8xf32>, vector<8x8xf32> -> vector<8x8xf32>
    %372 = arith.addf %371, %14 : vector<8x8xf32>
    %cst_121 = arith.constant dense<0xFF800000> : vector<8xf32>
    %373 = vector.multi_reduction <maximumf>, %372, %cst_121 [1] : vector<8x8xf32> to vector<8xf32>
    %374 = vector.shape_cast %373 : vector<8xf32> to vector<8x1xf32>
    %375 = vector.broadcast %374 : vector<8x1xf32> to vector<8x8xf32>
    %376 = arith.subf %372, %375 : vector<8x8xf32>
    %377 = math.exp %376 : vector<8x8xf32>
    %cst_122 = arith.constant dense<0.000000e+00> : vector<8x8xf32>
    %378 = tpu.matmul %377, %370, %cst_122 {dimension_numbers = #tpu.dot_dimension_numbers<[1], [0], [0], [1], [0, 0, 1, 1], [], []>} : vector<8x8xf32>, vector<8x8xf32>, vector<8x8xf32> -> vector<8x8xf32>
    %cst_123 = arith.constant dense<0.000000e+00> : vector<8xf32>
    %379 = vector.multi_reduction <add>, %377, %cst_123 [1] : vector<8x8xf32> to vector<8xf32>
    %380 = vector.shape_cast %379 : vector<8xf32> to vector<8x1xf32>
    %381 = tpu.concatenate %341, %354, %367, %380 in 1 : vector<8x1xf32>, vector<8x1xf32>, vector<8x1xf32>, vector<8x1xf32> -> vector<8x4xf32>
    %382 = tpu.reciprocal %381 {approx = true} : vector<8x4xf32> -> vector<8x4xf32>
    %383 = vector.extract_strided_slice %382 {offsets = [0, 0], sizes = [8, 1], strides = [1, 1]} : vector<8x4xf32> to vector<8x1xf32>
    %384 = vector.broadcast %383 : vector<8x1xf32> to vector<8x8xf32>
    %385 = arith.mulf %339, %384 : vector<8x8xf32>
    %386 = vector.extract_strided_slice %382 {offsets = [0, 1], sizes = [8, 1], strides = [1, 1]} : vector<8x4xf32> to vector<8x1xf32>
    %387 = vector.broadcast %386 : vector<8x1xf32> to vector<8x8xf32>
    %388 = arith.mulf %352, %387 : vector<8x8xf32>
    %389 = vector.extract_strided_slice %382 {offsets = [0, 2], sizes = [8, 1], strides = [1, 1]} : vector<8x4xf32> to vector<8x1xf32>
    %390 = vector.broadcast %389 : vector<8x1xf32> to vector<8x8xf32>
    %391 = arith.mulf %365, %390 : vector<8x8xf32>
    %392 = vector.extract_strided_slice %382 {offsets = [0, 3], sizes = [8, 1], strides = [1, 1]} : vector<8x4xf32> to vector<8x1xf32>
    %393 = vector.broadcast %392 : vector<8x1xf32> to vector<8x8xf32>
    %394 = arith.mulf %378, %393 : vector<8x8xf32>
    %395 = tpu.concatenate %385, %388, %391, %394 in 1 : vector<8x8xf32>, vector<8x8xf32>, vector<8x8xf32>, vector<8x8xf32> -> vector<8x32xf32>
    %396 = tpu.concatenate %328, %395 in 0 : vector<8x32xf32>, vector<8x32xf32> -> vector<16x32xf32>
    %c0_124 = arith.constant 0 : index
    %c0_125 = arith.constant 0 : index
    %397 = vector.load %arg20[%c0_124, %c0_125] : memref<32x32xf32, #tpu.memory_space<vmem>>, vector<32x32xf32>
    %cst_126 = arith.constant dense<0.000000e+00> : vector<16x32xf32>
    %398 = tpu.matmul %396, %397, %cst_126 {dimension_numbers = #tpu.dot_dimension_numbers<[1], [0], [0], [1], [0, 0, 1, 1], [], []>} : vector<16x32xf32>, vector<32x32xf32>, vector<16x32xf32> -> vector<16x32xf32>
    %c0_127 = arith.constant 0 : index
    %c0_128 = arith.constant 0 : index
    %399 = vector.load %arg21[%c0_127, %c0_128] : memref<1x32xf32, #tpu.memory_space<vmem>>, vector<1x32xf32>
    %400 = vector.broadcast %399 : vector<1x32xf32> to vector<16x32xf32>
    %401 = arith.addf %398, %400 : vector<16x32xf32>
    %402 = arith.addf %232, %401 : vector<16x32xf32>
    %c0_129 = arith.constant 0 : index
    %c0_130 = arith.constant 0 : index
    %403 = vector.load %arg16[%c0_129, %c0_130] : memref<1x32xf32, #tpu.memory_space<vmem>>, vector<1x32xf32>
    %c0_131 = arith.constant 0 : index
    %c0_132 = arith.constant 0 : index
    %404 = vector.load %arg17[%c0_131, %c0_132] : memref<1x32xf32, #tpu.memory_space<vmem>>, vector<1x32xf32>
    %cst_133 = arith.constant dense<0.000000e+00> : vector<16xf32>
    %405 = vector.multi_reduction <add>, %402, %cst_133 [1] : vector<16x32xf32> to vector<16xf32>
    %406 = vector.shape_cast %405 : vector<16xf32> to vector<16x1xf32>
    %cst_134 = arith.constant 3.200000e+01 : f32
    %407 = vector.broadcast %cst_134 : f32 to vector<16x1xf32>
    %408 = arith.divf %406, %407 : vector<16x1xf32>
    %409 = vector.broadcast %408 : vector<16x1xf32> to vector<16x32xf32>
    %410 = arith.subf %402, %409 : vector<16x32xf32>
    %411 = arith.mulf %410, %410 : vector<16x32xf32>
    %cst_135 = arith.constant dense<0.000000e+00> : vector<16xf32>
    %412 = vector.multi_reduction <add>, %411, %cst_135 [1] : vector<16x32xf32> to vector<16xf32>
    %413 = vector.shape_cast %412 : vector<16xf32> to vector<16x1xf32>
    %cst_136 = arith.constant 3.200000e+01 : f32
    %414 = vector.broadcast %cst_136 : f32 to vector<16x1xf32>
    %415 = arith.divf %413, %414 : vector<16x1xf32>
    %416 = vector.broadcast %408 : vector<16x1xf32> to vector<16x32xf32>
    %417 = arith.subf %402, %416 : vector<16x32xf32>
    %cst_137 = arith.constant 9.99999974E-6 : f32
    %418 = vector.broadcast %cst_137 : f32 to vector<16x1xf32>
    %419 = arith.addf %415, %418 : vector<16x1xf32>
    %420 = math.rsqrt %419 : vector<16x1xf32>
    %421 = vector.broadcast %420 : vector<16x1xf32> to vector<16x32xf32>
    %422 = arith.mulf %417, %421 : vector<16x32xf32>
    %423 = vector.broadcast %403 : vector<1x32xf32> to vector<16x32xf32>
    %424 = arith.mulf %422, %423 : vector<16x32xf32>
    %425 = vector.broadcast %404 : vector<1x32xf32> to vector<16x32xf32>
    %426 = arith.addf %424, %425 : vector<16x32xf32>
    %c0_138 = arith.constant 0 : index
    %c0_139 = arith.constant 0 : index
    %427 = vector.load %arg22[%c0_138, %c0_139] : memref<32x128xf32, #tpu.memory_space<vmem>>, vector<32x128xf32>
    %cst_140 = arith.constant dense<0.000000e+00> : vector<16x128xf32>
    %428 = tpu.matmul %426, %427, %cst_140 {dimension_numbers = #tpu.dot_dimension_numbers<[1], [0], [0], [1], [0, 0, 1, 1], [], []>} : vector<16x32xf32>, vector<32x128xf32>, vector<16x128xf32> -> vector<16x128xf32>
    %c0_141 = arith.constant 0 : index
    %c0_142 = arith.constant 0 : index
    %429 = vector.load %arg23[%c0_141, %c0_142] : memref<1x128xf32, #tpu.memory_space<vmem>>, vector<1x128xf32>
    %430 = vector.broadcast %429 : vector<1x128xf32> to vector<16x128xf32>
    %431 = arith.addf %428, %430 : vector<16x128xf32>
    %cst_143 = arith.constant 5.000000e-01 : f32
    %432 = vector.broadcast %cst_143 : f32 to vector<16x128xf32>
    %433 = arith.mulf %432, %431 : vector<16x128xf32>
    %cst_144 = arith.constant 4.471500e-02 : f32
    %434 = vector.broadcast %cst_144 : f32 to vector<16x128xf32>
    %435 = arith.mulf %434, %431 : vector<16x128xf32>
    %436 = arith.mulf %435, %431 : vector<16x128xf32>
    %437 = arith.mulf %436, %431 : vector<16x128xf32>
    %438 = arith.addf %431, %437 : vector<16x128xf32>
    %cst_145 = arith.constant 0.797884583 : f32
    %439 = vector.broadcast %cst_145 : f32 to vector<16x128xf32>
    %440 = arith.mulf %439, %438 : vector<16x128xf32>
    %441 = math.tanh %440 : vector<16x128xf32>
    %cst_146 = arith.constant 1.000000e+00 : f32
    %442 = vector.broadcast %cst_146 : f32 to vector<16x128xf32>
    %443 = arith.addf %442, %441 : vector<16x128xf32>
    %444 = arith.mulf %433, %443 : vector<16x128xf32>
    %c0_147 = arith.constant 0 : index
    %c0_148 = arith.constant 0 : index
    %445 = vector.load %arg24[%c0_147, %c0_148] : memref<128x32xf32, #tpu.memory_space<vmem>>, vector<128x32xf32>
    %cst_149 = arith.constant dense<0.000000e+00> : vector<16x32xf32>
    %446 = tpu.matmul %444, %445, %cst_149 {dimension_numbers = #tpu.dot_dimension_numbers<[1], [0], [0], [1], [0, 0, 1, 1], [], []>} : vector<16x128xf32>, vector<128x32xf32>, vector<16x32xf32> -> vector<16x32xf32>
    %c0_150 = arith.constant 0 : index
    %c0_151 = arith.constant 0 : index
    %447 = vector.load %arg25[%c0_150, %c0_151] : memref<1x32xf32, #tpu.memory_space<vmem>>, vector<1x32xf32>
    %448 = vector.broadcast %447 : vector<1x32xf32> to vector<16x32xf32>
    %449 = arith.addf %446, %448 : vector<16x32xf32>
    %450 = arith.addf %402, %449 : vector<16x32xf32>
    %c0_152 = arith.constant 0 : index
    %c0_153 = arith.constant 0 : index
    %451 = vector.load %arg26[%c0_152, %c0_153] : memref<1x32xf32, #tpu.memory_space<vmem>>, vector<1x32xf32>
    %c0_154 = arith.constant 0 : index
    %c0_155 = arith.constant 0 : index
    %452 = vector.load %arg27[%c0_154, %c0_155] : memref<1x32xf32, #tpu.memory_space<vmem>>, vector<1x32xf32>
    %cst_156 = arith.constant dense<0.000000e+00> : vector<16xf32>
    %453 = vector.multi_reduction <add>, %450, %cst_156 [1] : vector<16x32xf32> to vector<16xf32>
    %454 = vector.shape_cast %453 : vector<16xf32> to vector<16x1xf32>
    %cst_157 = arith.constant 3.200000e+01 : f32
    %455 = vector.broadcast %cst_157 : f32 to vector<16x1xf32>
    %456 = arith.divf %454, %455 : vector<16x1xf32>
    %457 = vector.broadcast %456 : vector<16x1xf32> to vector<16x32xf32>
    %458 = arith.subf %450, %457 : vector<16x32xf32>
    %459 = arith.mulf %458, %458 : vector<16x32xf32>
    %cst_158 = arith.constant dense<0.000000e+00> : vector<16xf32>
    %460 = vector.multi_reduction <add>, %459, %cst_158 [1] : vector<16x32xf32> to vector<16xf32>
    %461 = vector.shape_cast %460 : vector<16xf32> to vector<16x1xf32>
    %cst_159 = arith.constant 3.200000e+01 : f32
    %462 = vector.broadcast %cst_159 : f32 to vector<16x1xf32>
    %463 = arith.divf %461, %462 : vector<16x1xf32>
    %464 = vector.broadcast %456 : vector<16x1xf32> to vector<16x32xf32>
    %465 = arith.subf %450, %464 : vector<16x32xf32>
    %cst_160 = arith.constant 9.99999974E-6 : f32
    %466 = vector.broadcast %cst_160 : f32 to vector<16x1xf32>
    %467 = arith.addf %463, %466 : vector<16x1xf32>
    %468 = math.rsqrt %467 : vector<16x1xf32>
    %469 = vector.broadcast %468 : vector<16x1xf32> to vector<16x32xf32>
    %470 = arith.mulf %465, %469 : vector<16x32xf32>
    %471 = vector.broadcast %451 : vector<1x32xf32> to vector<16x32xf32>
    %472 = arith.mulf %470, %471 : vector<16x32xf32>
    %473 = vector.broadcast %452 : vector<1x32xf32> to vector<16x32xf32>
    %474 = arith.addf %472, %473 : vector<16x32xf32>
    %c0_161 = arith.constant 0 : index
    %c0_162 = arith.constant 0 : index
    %475 = vector.load %arg28[%c0_161, %c0_162] : memref<32x256xf32, #tpu.memory_space<vmem>>, vector<32x256xf32>
    %cst_163 = arith.constant dense<0.000000e+00> : vector<16x256xf32>
    %476 = tpu.matmul %474, %475, %cst_163 {dimension_numbers = #tpu.dot_dimension_numbers<[1], [0], [0], [1], [0, 0, 1, 1], [], []>} : vector<16x32xf32>, vector<32x256xf32>, vector<16x256xf32> -> vector<16x256xf32>
    %c0_164 = arith.constant 0 : index
    %c0_165 = arith.constant 0 : index
    %477 = vector.load %arg29[%c0_164, %c0_165] : memref<16x256xf32, #tpu.memory_space<vmem>>, vector<16x256xf32>
    tpu.vector_store %arg29[%c0_164, %c0_165], %476 {strides = array<i32>} : memref<16x256xf32, #tpu.memory_space<vmem>>, vector<16x256xf32>,
    return
  }
}

</mosaic_0001>

<bundles_post_ra>
// kernel: _lambda_.1
= control target key start
LH: loop header
LB: loop body
LE: loop exit
PB: predicated region body
PF: predicated region fallthrough
CT: control target
= control target key end

     0   :  { %vm142_vm0 = vcmask 261120   ;;  %s4691_s6 = smov 6   ;;  %s4692_s10 = smov 2   ;;  %v4694_v34 = vmov 0.0   ;;  %vm4695_vm1 = vmmov 0   ;;  %vm281_vm2 = vcmask 64512   ;;  %s5314_s0 = inlined_call_operand.smem [shape: u32[30], index: -1, kind: input, shape index: {}] }
   0x1   :  { %s1_s5 = sld [smem:[%s5314_s0]]   ;;  %s4693_s14 = smov 3   ;;  %4289 = vmatprep.subr.mxu0 %v4694_v34  ;;  %4291 = vmatprep.mubr.msk.f32.mxu0 %vm4695_vm1, %v4694_v34  ;;  %v125_v55 = vlaneseq  ;;  %vm930_vm4 = vcmask 7168   ;;  %vm932_vm5 = vcmask 15360   ;;  %vm934_vm6 = vcmask 23552  }
   0x2   :  { %s4028_s9 = sld [smem:[%s5314_s0 + %s4691_s6]]   ;;  %s4696_s18 = smov 7   ;;  %vm971_vm7 = vcmask 130048   ;;  %vm973_vm8 = vcmask 195584  }
   0x3   :  { %s4024_s13 = sld [smem:[%s5314_s0 + %s4692_s10]]   ;;  %s4697_s22 = smov 88   ;;  %v126_v56 = vshrl.u32 %v125_v55, 7  ;;  %v128_v59 = vand.u32 127, %v125_v55 }
   0x4   :  { %s4025_s17 = sld [smem:[%s5314_s0 + %s4693_s14]]   ;;  %s4698_s23 = smov 96  }
   0x5   :  { %s4029_s21 = sld [smem:[%s5314_s0 + %s4696_s18]]   ;;  %s4699_s24 = smov 120   ;;  %v132_v57 = vsub.s32 0, %v126_v56  ;;  %vm129_vm3 = vcmp.ge.s32.totalorder %v126_v56, %v128_v59 }
   0x6   :  { %s4700_s25 = smov 112   ;;  %s4701_s26 = smov 80  }
   0x7   :  { %v4745_v0 = vld [vmem:[%s1_s5] sm:$0xff]  ;;  %v4747_v1 = vld [vmem:[%s1_s5 + $0x8] sm:$0xff]  ;;  %s4702_s27 = smov 104   ;;  %s4703_s28 = smov 72  }
   0x8   :  { %v143_v2 = vsel %vm142_vm0, %v4745_v0, 0.0  ;;  %v146_v3 = vsel %vm142_vm0, %v4747_v1, 0.0  ;;  %v189_v14 = vld [vmem:[%s4028_s9 + $0x18] sm:$0xff]  ;;  %v188_v15 = vld [vmem:[%s4028_s9 + $0x10] sm:$0xff]  ;;  %v187_v16 = vld [vmem:[%s4028_s9 + $0x8] sm:$0xff]  ;;  %s4704_s29 = smov 64  }
   0x9   :  { %144 = vadd.xlane.f32.xlu0 %v143_v2  ;;  %4268 = vmatprep.subr.mxu1 %v189_v14  ;;  %v186_v17 = vld [vmem:[%s4028_s9] sm:$0xff]  ;;  %s4705_s30 = smov 56   ;;  %s4706_s1 = smov 48  }
   0xa   :  { %4269 = vmatpush3.msra.mxu1 %v189_v14  ;;  %v4052_v25 = vld [vmem:[%s4024_s13] ss:$0 sm:$0xff]  ;;  %s4707_s2 = smov 40   ;;  %s4708_s3 = smov 1  }
   0xb   :  { %4270 = vmatprep.subr.mxu1 %v188_v15  ;;  %v4053_v27 = vld [vmem:[%s4025_s17] ss:$0 sm:$0xff]  ;;  %s4023_s6 = sld [smem:[%s5314_s0 + %s4708_s3]]   ;;  %s4713_s7 = smov 16  }
   0xc   :  { %4271 = vmatpush3.msra.mxu1 %v188_v15  ;;  %v4054_v36 = vld [vmem:[%s4029_s21] ss:$0 sm:$0xff]  ;;  %s4714_s8 = smov 8   ;;  %s4715_s9 = smov 24  }
   0xd   :  { %147 = vadd.xlane.f32.xlu0 %v146_v3  ;;  %4272 = vmatprep.subr.mxu1 %v187_v16  ;;  %s4030_s12 = sld [smem:[%s5314_s0 + %s4714_s8]]   ;;  %s4716_s13 = smov 9  }
   0xe   :  { %4273 = vmatpush3.msra.mxu1 %v187_v16  ;;  %s4031_s16 = sld [smem:[%s5314_s0 + %s4716_s13]]   ;;  %s4717_s17 = smov 10  }
   0xf   :  { %4274 = vmatprep.subr.mxu1 %v186_v17  ;;  %s4032_s20 = sld [smem:[%s5314_s0 + %s4717_s17]]   ;;  %s4718_s21 = smov 4  }
  0x10   :  { %4275 = vmatpush3.msra.mxu1 %v186_v17  ;;  %s4026_s5 = sld [smem:[%s5314_s0 + %s4718_s21]]   ;;  %s4720_s13 = smov 12  }
  0x11   :  { %4279 = vmatprep.subr.mxu1 %v4694_v34  ;;  %v124_v58 = vld [vmem:[%s4023_s6] sm:$0x3]  ;;  %s4719_s6 = smov 5   ;;  %s4721_s17 = smov 11  }
  0x12   :  { %v133_v60 = vrot.slane %v124_v58, %v132_v57  ;;  %s4722_s21 = smov 13   ;;  %s4038_s11 = sld [smem:[%s5314_s0 + %s4713_s7]]  }
  0x14   :  { %v4847_v61 = vsel %vm129_vm3, %v133_v60, -1e+09 }
  0x92   :  { %v145_v4 = vpop.xlane.xlu0 %144 }
  0x93   :  { %v150_v5 = vmul.f32 0.03125, %v145_v4 }
  0x95   :  { %v152_v6 = vsub.f32 %v4745_v0, %v150_v5 }
  0x96   :  { %v148_v7 = vpop.xlane.xlu0 %147 }
  0x97   :  { %v151_v8 = vmul.f32 0.03125, %v148_v7  ;;  %v154_v9 = vmul.f32 %v152_v6, %v152_v6 }
  0x99   :  { %v153_v10 = vsub.f32 %v4747_v1, %v151_v8  ;;  %v156_v11 = vsel %vm142_vm0, %v154_v9, 0.0  ;;  %v137_v8 = vsub.s32 1, %v126_v56 }
  0x9a   :  { %157 = vadd.xlane.f32.xlu1 %v156_v11 }
  0x9b   :  { %v155_v12 = vmul.f32 %v153_v10, %v153_v10 }
  0x9d   :  { %v159_v13 = vsel %vm142_vm0, %v155_v12, 0.0  ;;  %v138_v12 = vrot.slane %v124_v58, %v137_v8 }
  0x9e   :  { %160 = vadd.xlane.f32.xlu1 %v159_v13 }
  0x9f   :  { %v4857_v17 = vsel %vm129_vm3, %v138_v12, -1e+09 }
 0x123   :  { %v158_v18 = vpop.xlane.xlu1 %157 }
 0x124   :  { %v162_v19 = vmul.f32 0.03125, %v158_v18 }
 0x126   :  { %v164_v20 = vadd.f32 1e-05, %v162_v19 }
 0x127   :  { %v161_v21 = vpop.xlane.xlu1 %160 }
 0x128   :  { %4623 = vrsqrt.f32 %v164_v20  ;;  %v163_v22 = vmul.f32 0.03125, %v161_v21 }
 0x12a   :  { %v165_v23 = vadd.f32 1e-05, %v163_v22 }
 0x12c   :  { %4625 = vrsqrt.f32 %v165_v23 }
 0x135   :  { %v4624_v24 = vpop.eup %4623 }
 0x136   :  { %v168_v26 = vmul.f32 %v4624_v24, %v152_v6 }
 0x138   :  { %v176_v28 = vmul.f32 %v4052_v25, %v168_v26 }
 0x139   :  { %v4626_v29 = vpop.eup %4625 }
 0x13a   :  { %v169_v30 = vmul.f32 %v4626_v29, %v153_v10  ;;  %v184_v31 = vadd.f32 %v4053_v27, %v176_v28 }
 0x13c   :  { %v177_v32 = vmul.f32 %v4052_v25, %v169_v30  ;;  %4276 = vmatprep.mubr.msk.f32.mxu1 %vm142_vm0, %v184_v31 }
 0x13e   :  { %v185_v33 = vadd.f32 %v4053_v27, %v177_v32 }
 0x140   :  { %4277 = vmatmul.mubr.msk.f32.vlgmr.msra.gmra.mxu1 %vm142_vm0, %v185_v33 }
 0x141   :  { %4281 = vmatprep.mubr.msk.f32.mxu1 %vm4695_vm1, %v4694_v34 }
 0x200   :  { %v4278_v35 = vpop.f32.mrf.mxu1 }
 0x201   :  { %v4783_v39 = vadd.f32 %v4278_v35, %v4054_v36 }
 0x202   :  { %v269_v37 = vpop.f32.mrf.mxu1 }
 0x203   :  { %v270_v38 = vadd.f32 %v4054_v36, %v269_v37 }
 0x205   :  { %443 = vrot.lane.b32.xlu1 %v270_v38, %s4697_s22  ;;  %279 = vrot.lane.b32.xlu0 %v270_v38, %s4698_s23 }
 0x209   :  { %441 = vrot.lane.b32.xlu1 %v270_v38, %s4699_s24  ;;  %604 = vrot.lane.b32.xlu0 %v270_v38, %s4700_s25 }
 0x20d   :  { %606 = vrot.lane.b32.xlu1 %v270_v38, %s4701_s26  ;;  %767 = vrot.lane.b32.xlu0 %v270_v38, %s4702_s27 }
 0x211   :  { %769 = vrot.lane.b32.xlu1 %v270_v38, %s4703_s28  ;;  %1139 = vrot.lane.b32.xlu0 %v4783_v39, %s4697_s22 }
 0x215   :  { %976 = vrot.lane.b32.xlu1 %v4783_v39, %s4698_s23  ;;  %1302 = vrot.lane.b32.xlu0 %v4783_v39, %s4701_s26 }
 0x219   :  { %1137 = vrot.lane.b32.xlu1 %v4783_v39, %s4699_s24  ;;  %1465 = vrot.lane.b32.xlu0 %v4783_v39, %s4703_s28 }
 0x21d   :  { %1300 = vrot.lane.b32.xlu1 %v4783_v39, %s4700_s25  ;;  %362 = vrot.lane.b32.xlu0 %v270_v38, %s4704_s29 }
 0x221   :  { %1463 = vrot.lane.b32.xlu1 %v4783_v39, %s4702_s27 }
 0x225   :  { %525 = vrot.lane.b32.xlu1 %v270_v38, %s4705_s30 }
 0x229   :  { %688 = vrot.lane.b32.xlu1 %v270_v38, %s4706_s1 }
 0x22d   :  { %851 = vrot.lane.b32.xlu1 %v270_v38, %s4707_s2 }
 0x277   :  { %v444_v40 = vpop.permute.xlu1 %443  ;;  %v280_v41 = vpop.permute.xlu0 %279 }
 0x278   :  { %4280 = vmatpush3.xpose.msk.msra.mxu1 %vm281_vm2, %v280_v41  ;;  %4290 = vmatpush3.xpose.msk.msra.mxu0 %vm281_vm2, %v444_v40 }
 0x279   :  { %4299 = vmatprep.subr.mxu0 %v4694_v34  ;;  %4284 = vmatprep.subr.mxu1 %v4694_v34 }
 0x27b   :  { %v442_v42 = vpop.permute.xlu1 %441  ;;  %4282 = vmatmul.mubr.msk.f32.vlgmr.msra.gmra.mxu1 %vm281_vm2, %v270_v38  ;;  %v605_v43 = vpop.permute.xlu0 %604 }
 0x27c   :  { %4292 = vmatmul.mubr.msk.f32.vlgmr.msra.gmra.mxu0 %vm281_vm2, %v442_v42  ;;  %4286 = vmatprep.mubr.msk.f32.mxu1 %vm4695_vm1, %v4694_v34 }
 0x27d   :  { %4301 = vmatprep.mubr.msk.f32.mxu0 %vm4695_vm1, %v4694_v34 }
 0x27f   :  { %v607_v44 = vpop.permute.xlu1 %606  ;;  %v768_v45 = vpop.permute.xlu0 %767 }
 0x280   :  { %4300 = vmatpush3.xpose.msk.msra.mxu0 %vm281_vm2, %v607_v44 }
 0x281   :  { %4309 = vmatprep.subr.mxu0 %v4694_v34 }
 0x283   :  { %v770_v46 = vpop.permute.xlu1 %769  ;;  %4302 = vmatmul.mubr.msk.f32.vlgmr.msra.gmra.mxu0 %vm281_vm2, %v605_v43  ;;  %v1140_v47 = vpop.permute.xlu0 %1139 }
 0x284   :  { %4310 = vmatpush3.xpose.msk.msra.mxu0 %vm281_vm2, %v770_v46  ;;  %4311 = vmatprep.mubr.msk.f32.mxu0 %vm4695_vm1, %v4694_v34 }
 0x285   :  { %4319 = vmatprep.subr.mxu0 %v4694_v34 }
 0x287   :  { %v977_v48 = vpop.permute.xlu1 %976  ;;  %4312 = vmatmul.mubr.msk.f32.vlgmr.msra.gmra.mxu0 %vm281_vm2, %v768_v45  ;;  %v1303_v49 = vpop.permute.xlu0 %1302 }
 0x288   :  { %4320 = vmatpush3.xpose.msk.msra.mxu0 %vm281_vm2, %v977_v48  ;;  %4321 = vmatprep.mubr.msk.f32.mxu0 %vm4695_vm1, %v4694_v34 }
 0x289   :  { %4329 = vmatprep.subr.mxu0 %v4694_v34 }
 0x28b   :  { %v1138_v50 = vpop.permute.xlu1 %1137  ;;  %4322 = vmatmul.mubr.msk.f32.vlgmr.msra.gmra.mxu0 %vm281_vm2, %v4783_v39  ;;  %v1466_v51 = vpop.permute.xlu0 %1465 }
 0x28c   :  { %4330 = vmatpush3.xpose.msk.msra.mxu0 %vm281_vm2, %v1140_v47  ;;  %4331 = vmatprep.mubr.msk.f32.mxu0 %vm4695_vm1, %v4694_v34 }
 0x28d   :  { %4339 = vmatprep.subr.mxu0 %v4694_v34 }
 0x28f   :  { %4332 = vmatmul.mubr.msk.f32.vlgmr.msra.gmra.mxu0 %vm281_vm2, %v1138_v50  ;;  %v363_v52 = vpop.permute.xlu0 %362  ;;  %v1301_v53 = vpop.permute.xlu1 %1300 }
 0x290   :  { %4285 = vmatpush3.msra.mxu1 %v363_v52  ;;  %4340 = vmatpush3.xpose.msk.msra.mxu0 %vm281_vm2, %v1303_v49 }
 0x291   :  { %4341 = vmatprep.mubr.msk.f32.mxu0 %vm4695_vm1, %v4694_v34  ;;  %4349 = vmatprep.subr.mxu0 %v4694_v34 }
 0x292   :  { %4294 = vmatprep.subr.mxu1 %v4694_v34 }
 0x293   :  { %4342 = vmatmul.mubr.msk.f32.vlgmr.msra.gmra.mxu0 %vm281_vm2, %v1301_v53  ;;  %v1464_v54 = vpop.permute.xlu1 %1463 }
 0x294   :  { %4350 = vmatpush3.xpose.msk.msra.mxu0 %vm281_vm2, %v1466_v51  ;;  %4351 = vmatprep.mubr.msk.f32.mxu0 %vm4695_vm1, %v4694_v34 }
 0x297   :  { %4352 = vmatmul.mubr.msk.f32.vlgmr.msra.gmra.mxu0 %vm281_vm2, %v1464_v54  ;;  %v526_v36 = vpop.permute.xlu1 %525 }
 0x29b   :  { %v689_v37 = vpop.permute.xlu1 %688 }
 0x29f   :  { %v852_v38 = vpop.permute.xlu1 %851 }
 0x33b   :  { %v352_v62 = vpop.f32.mrf.mxu1 }
 0x33c   :  { %v353_v63 = vadd.f32 %v352_v62, %v4847_v61  ;;  %v515_v2 = vpop.f32.mrf.mxu0 }
 0x33d   :  { %v516_v3 = vadd.f32 %v515_v2, %v4847_v61  ;;  %v4283_v4 = vpop.f32.mrf.mxu1 }
 0x33e   :  { %v4293_v5 = vpop.f32.mrf.mxu0  ;;  %v356_v6 = vsel %vm281_vm2, %v353_v63, -inf }
 0x33f   :  { %357 = vmax.xlane.f32.xlu0 %v356_v6  ;;  %v519_v7 = vsel %vm281_vm2, %v516_v3, -inf  ;;  %v4709_v5 = vmov 2   ;;  %v4710_v6 = vmov 1  }
 0x340   :  { %520 = vmax.xlane.f32.xlu1 %v519_v7  ;;  %4610 = vset.pattern.permute.xlu0 %v4710_v6 }
 0x341   :  { %4611 = vset.pattern.permute.xlu1 %v4709_v5 }
 0x343   :  { %v678_v9 = vpop.f32.mrf.mxu0 }
 0x344   :  { %v679_v10 = vadd.f32 %v678_v9, %v4847_v61 }
 0x345   :  { %v4303_v11 = vpop.f32.mrf.mxu0 }
 0x346   :  { %v682_v13 = vsel %vm281_vm2, %v679_v10, -inf }
 0x347   :  { %683 = vmax.xlane.f32.xlu0 %v682_v13  ;;  %v841_v14 = vpop.f32.mrf.mxu0 }
 0x348   :  { %v842_v15 = vadd.f32 %v841_v14, %v4847_v61 }
 0x349   :  { %v4313_v16 = vpop.f32.mrf.mxu0 }
 0x34a   :  { %v845_v18 = vsel %vm281_vm2, %v842_v15, -inf }
 0x34b   :  { %846 = vmax.xlane.f32.xlu0 %v845_v18  ;;  %v1048_v19 = vpop.f32.mrf.mxu0 }
 0x34c   :  { %v1049_v20 = vadd.f32 %v1048_v19, %v4857_v17 }
 0x34d   :  { %v4323_v21 = vpop.f32.mrf.mxu0 }
 0x34e   :  { %v1052_v22 = vsel %vm281_vm2, %v1049_v20, -inf }
 0x34f   :  { %1053 = vmax.xlane.f32.xlu0 %v1052_v22  ;;  %v1211_v23 = vpop.f32.mrf.mxu0 }
 0x350   :  { %v4867_v29 = vadd.f32 %v1211_v23, %v4857_v17 }
 0x351   :  { %1221 = vrot.lane.b32.xlu1 %v4783_v39, %s4705_s30  ;;  %v4333_v24 = vpop.f32.mrf.mxu0 }
 0x352   :  { %v1215_v31 = vsel %vm281_vm2, %v4867_v29, -inf }
 0x353   :  { %v1374_v25 = vpop.f32.mrf.mxu0 }
 0x354   :  { %v4877_v33 = vadd.f32 %v1374_v25, %v4857_v17 }
 0x355   :  { %v4343_v26 = vpop.f32.mrf.mxu0 }
 0x356   :  { %v1378_v35 = vsel %vm281_vm2, %v4877_v33, -inf }
 0x357   :  { %v1537_v27 = vpop.f32.mrf.mxu0 }
 0x358   :  { %v4870_v30 = vadd.f32 %v1537_v27, %v4857_v17 }
 0x359   :  { %v4353_v28 = vpop.f32.mrf.mxu0 }
 0x35a   :  { %v1541_v32 = vsel %vm281_vm2, %v4870_v30, -inf }
 0x365   :  { %1058 = vrot.lane.b32.xlu0 %v4783_v39, %s4704_s29 }
 0x375   :  { %1216 = vmax.xlane.f32.xlu1 %v1215_v31 }
 0x379   :  { %1542 = vmax.xlane.f32.xlu1 %v1541_v32 }
 0x384   :  { %1379 = vmax.xlane.f32.xlu0 %v1378_v35 }
 0x38a   :  { %1547 = vrot.lane.b32.xlu1 %v4783_v39, %s4707_s2 }
 0x39a   :  { %1384 = vrot.lane.b32.xlu0 %v4783_v39, %s4706_s1 }
 0x3c8   :  { %v358_v40 = vpop.xlane.xlu0 %357 }
 0x3c9   :  { %v359_v41 = vsub.f32 %v353_v63, %v358_v40  ;;  %v521_v42 = vpop.xlane.xlu1 %520 }
 0x3ca   :  { %v522_v43 = vsub.f32 %v516_v3, %v521_v42 }
 0x3cb   :  { %v360_v44 = vmul.f32 1.442695, %v359_v41 }
 0x3cc   :  { %v523_v45 = vmul.f32 1.442695, %v522_v43 }
 0x3cd   :  { %4627 = vpow2.f32 %v360_v44  ;;  %v1222_v3 = vpop.permute.xlu1 %1221 }
 0x3ce   :  { %4629 = vpow2.f32 %v523_v45 }
 0x3d0   :  { %v684_v46 = vpop.xlane.xlu0 %683 }
 0x3d1   :  { %v685_v47 = vsub.f32 %v679_v10, %v684_v46 }
 0x3d3   :  { %v686_v48 = vmul.f32 1.442695, %v685_v47 }
 0x3d4   :  { %v847_v49 = vpop.xlane.xlu0 %846 }
 0x3d5   :  { %4631 = vpow2.f32 %v686_v48  ;;  %v848_v50 = vsub.f32 %v842_v15, %v847_v49 }
 0x3d7   :  { %v849_v51 = vmul.f32 1.442695, %v848_v50 }
 0x3d8   :  { %v1054_v52 = vpop.xlane.xlu0 %1053 }
 0x3d9   :  { %4633 = vpow2.f32 %v849_v51  ;;  %v1055_v39 = vsub.f32 %v1049_v20, %v1054_v52 }
 0x3da   :  { %v4628_v53 = vpop.eup %4627 }
 0x3db   :  { %v4630_v54 = vpop.eup %4629  ;;  %v1056_v55 = vmul.f32 1.442695, %v1055_v39  ;;  %4287 = vmatmul.mubr.msk.f32.vlgmr.msra.gmra.mxu1 %vm281_vm2, %v4628_v53  ;;  %v438_v56 = vsel %vm281_vm2, %v4628_v53, 0.0  ;;  %v4712_v53 = vmov 0  }
 0x3dc   :  { %4295 = vmatpush3.msra.mxu1 %v526_v36  ;;  %439 = vadd.xlane.f32.xlu0 %v438_v56  ;;  %v601_v57 = vsel %vm281_vm2, %v4630_v54, 0.0  ;;  %v1059_v62 = vpop.permute.xlu0 %1058 }
 0x3dd   :  { %4635 = vpow2.f32 %v1056_v55  ;;  %602 = vadd.xlane.f32.xlu1 %v601_v57  ;;  %4296 = vmatprep.mubr.msk.f32.mxu1 %vm4695_vm1, %v4694_v34 }
 0x3de   :  { %4304 = vmatprep.subr.mxu1 %v4694_v34 }
 0x3df   :  { %4297 = vmatmul.mubr.msk.f32.vlgmr.msra.gmra.mxu1 %vm281_vm2, %v4630_v54 }
 0x3e0   :  { %4305 = vmatpush3.msra.mxu1 %v689_v37  ;;  %4306 = vmatprep.mubr.msk.f32.mxu1 %vm4695_vm1, %v4694_v34 }
 0x3e1   :  { %4314 = vmatprep.subr.mxu1 %v4694_v34 }
 0x3e2   :  { %v4632_v58 = vpop.eup %4631 }
 0x3e3   :  { %4307 = vmatmul.mubr.msk.f32.vlgmr.msra.gmra.mxu1 %vm281_vm2, %v4632_v58  ;;  %v764_v59 = vsel %vm281_vm2, %v4632_v58, 0.0 }
 0x3e4   :  { %4315 = vmatpush3.msra.mxu1 %v852_v38  ;;  %765 = vadd.xlane.f32.xlu0 %v764_v59 }
 0x3e5   :  { %4316 = vmatprep.mubr.msk.f32.mxu1 %vm4695_vm1, %v4694_v34  ;;  %4324 = vmatprep.subr.mxu1 %v4694_v34 }
 0x3e6   :  { %v4634_v60 = vpop.eup %4633 }
 0x3e7   :  { %4317 = vmatmul.mubr.msk.f32.vlgmr.msra.gmra.mxu1 %vm281_vm2, %v4634_v60  ;;  %v927_v63 = vsel %vm281_vm2, %v4634_v60, 0.0 }
 0x3e8   :  { %4325 = vmatpush3.msra.mxu1 %v1059_v62  ;;  %928 = vadd.xlane.f32.xlu1 %v927_v63 }
 0x3e9   :  { %4326 = vmatprep.mubr.msk.f32.mxu1 %vm4695_vm1, %v4694_v34  ;;  %4334 = vmatprep.subr.mxu1 %v4694_v34 }
 0x3ea   :  { %v4636_v2 = vpop.eup %4635 }
 0x3eb   :  { %4327 = vmatmul.mubr.msk.f32.vlgmr.msra.gmra.mxu1 %vm281_vm2, %v4636_v2  ;;  %v1134_v4 = vsel %vm281_vm2, %v4636_v2, 0.0 }
 0x3ec   :  { %4335 = vmatpush3.msra.mxu1 %v1222_v3  ;;  %1135 = vadd.xlane.f32.xlu0 %v1134_v4 }
 0x3ed   :  { %4336 = vmatprep.mubr.msk.f32.mxu1 %vm4695_vm1, %v4694_v34  ;;  %4344 = vmatprep.subr.mxu1 %v4694_v34 }
 0x3fe   :  { %v1217_v7 = vpop.xlane.xlu1 %1216 }
 0x3ff   :  { %v1218_v8 = vsub.f32 %v4867_v29, %v1217_v7  ;;  %v1668_v7 = vld [vmem:[%s4030_s12 + $0x10] sm:$0xff] }
 0x401   :  { %v1219_v9 = vmul.f32 1.442695, %v1218_v8  ;;  %v1667_v8 = vld [vmem:[%s4030_s12 + $0x8] sm:$0xff] }
 0x402   :  { %v1543_v10 = vpop.xlane.xlu1 %1542 }
 0x403   :  { %4637 = vpow2.f32 %v1219_v9  ;;  %v1544_v11 = vsub.f32 %v4870_v30, %v1543_v10  ;;  %v1666_v9 = vld [vmem:[%s4030_s12] sm:$0xff] }
 0x405   :  { %v1545_v12 = vmul.f32 1.442695, %v1544_v11 }
 0x406   :  { %v1548_v23 = vpop.permute.xlu1 %1547 }
 0x407   :  { %4639 = vpow2.f32 %v1545_v12 }
 0x40d   :  { %v1380_v13 = vpop.xlane.xlu0 %1379 }
 0x40e   :  { %v1381_v14 = vsub.f32 %v4877_v33, %v1380_v13  ;;  %v4711_v33 = vmov 3  }
 0x410   :  { %v4638_v15 = vpop.eup %4637  ;;  %v1382_v16 = vmul.f32 1.442695, %v1381_v14 }
 0x411   :  { %4337 = vmatmul.mubr.msk.f32.vlgmr.msra.gmra.mxu1 %vm281_vm2, %v4638_v15  ;;  %v1385_v18 = vpop.permute.xlu0 %1384  ;;  %v1297_v19 = vsel %vm281_vm2, %v4638_v15, 0.0 }
 0x412   :  { %4641 = vpow2.f32 %v1382_v16  ;;  %1298 = vadd.xlane.f32.xlu0 %v1297_v19  ;;  %4345 = vmatpush3.msra.mxu1 %v1385_v18 }
 0x413   :  { %4346 = vmatprep.mubr.msk.f32.mxu1 %vm4695_vm1, %v4694_v34  ;;  %4354 = vmatprep.subr.mxu1 %v4694_v34 }
 0x414   :  { %v4640_v20 = vpop.eup %4639 }
 0x415   :  { %v1623_v21 = vsel %vm281_vm2, %v4640_v20, 0.0 }
 0x416   :  { %1624 = vadd.xlane.f32.xlu1 %v1623_v21 }
 0x41f   :  { %v4642_v22 = vpop.eup %4641 }
 0x420   :  { %4347 = vmatmul.mubr.msk.f32.vlgmr.msra.gmra.mxu1 %vm281_vm2, %v4642_v22  ;;  %v1460_v24 = vsel %vm281_vm2, %v4642_v22, 0.0 }
 0x421   :  { %4355 = vmatpush3.msra.mxu1 %v1548_v23  ;;  %1461 = vadd.xlane.f32.xlu0 %v1460_v24 }
 0x422   :  { %4356 = vmatprep.mubr.msk.f32.mxu1 %vm4695_vm1, %v4694_v34 }
 0x424   :  { %4357 = vmatmul.mubr.msk.f32.vlgmr.msra.gmra.mxu1 %vm281_vm2, %v4640_v20 }
 0x465   :  { %v440_v25 = vpop.xlane.xlu0 %439 }
 0x466   :  { %v603_v26 = vpop.xlane.xlu1 %602 }
 0x467   :  { %v931_v28 = vsel %vm930_vm4, %v440_v25, %v603_v26 }
 0x46d   :  { %v766_v27 = vpop.xlane.xlu0 %765 }
 0x46e   :  { %v933_v29 = vsel %vm932_vm5, %v931_v28, %v766_v27 }
 0x471   :  { %v929_v30 = vpop.xlane.xlu1 %928 }
 0x472   :  { %v935_v31 = vsel %vm934_vm6, %v933_v29, %v929_v30 }
 0x473   :  { %4643 = vrcp.f32 %v935_v31 }
 0x475   :  { %v1136_v40 = vpop.xlane.xlu0 %1135 }
 0x480   :  { %v4644_v32 = vpop.eup %4643 }
 0x481   :  { %949 = vperm.xlu1 %4611, %v4644_v32   ;;  %944 = vperm.xlu0 %4610, %v4644_v32  }
 0x485   :  { %4612 = vset.pattern.permute.xlu1 %v4711_v33  ;;  %4618 = vset.pattern.permute.xlu0 %v4709_v5 }
 0x486   :  { %954 = vperm.xlu1 %4612, %v4644_v32  }
 0x48a   :  { %4613 = vset.pattern.permute.xlu1 %v4710_v6 }
 0x49b   :  { %v4932_v35 = vpop.f32.mrf.mxu1  ;;  %v1299_v43 = vpop.xlane.xlu0 %1298 }
 0x49c   :  { %v1626_v46 = vsel %vm930_vm4, %v1136_v40, %v1299_v43 }
 0x49d   :  { %v4288_v36 = vpop.f32.mrf.mxu1 }
 0x49f   :  { %v597_v37 = vpop.f32.mrf.mxu1  ;;  %v1625_v48 = vpop.xlane.xlu1 %1624 }
 0x4a1   :  { %v4298_v38 = vpop.f32.mrf.mxu1 }
 0x4a3   :  { %v760_v41 = vpop.f32.mrf.mxu1 }
 0x4a5   :  { %v4308_v42 = vpop.f32.mrf.mxu1 }
 0x4a7   :  { %v923_v44 = vpop.f32.mrf.mxu1 }
 0x4a9   :  { %v4318_v45 = vpop.f32.mrf.mxu1 }
 0x4aa   :  { %v1462_v47 = vpop.xlane.xlu0 %1461 }
 0x4ab   :  { %v1627_v49 = vsel %vm932_vm5, %v1626_v46, %v1462_v47  ;;  %v4936_v50 = vpop.f32.mrf.mxu1 }
 0x4ac   :  { %v1628_v51 = vsel %vm934_vm6, %v1627_v49, %v1625_v48 }
 0x4ad   :  { %4645 = vrcp.f32 %v1628_v51  ;;  %v4328_v52 = vpop.f32.mrf.mxu1 }
 0x4ba   :  { %v4646_v39 = vpop.eup %4645 }
 0x4bb   :  { %1637 = vperm.xlu1 %4613, %v4646_v39  }
 0x4bf   :  { %4614 = vset.pattern.permute.xlu1 %v4709_v5 }
 0x4c0   :  { %1642 = vperm.xlu1 %4614, %v4646_v39  }
 0x4c4   :  { %4615 = vset.pattern.permute.xlu1 %v4711_v33 }
 0x4c5   :  { %1647 = vperm.xlu1 %4615, %v4646_v39  }
 0x4c9   :  { %4616 = vset.pattern.permute.xlu1 %v4712_v53 }
 0x4ca   :  { %939 = vperm.xlu1 %4616, %v4644_v32  }
 0x4ce   :  { %1632 = vperm.xlu1 %4616, %v4646_v39   ;;  %v1807_v39 = vld [vmem:[%s4032_s20 + $0x18] sm:$0xff] }
 0x4cf   :  { %4370 = vmatprep.subr.mxu1 %v1807_v39 }
 0x4d0   :  { %4371 = vmatpush3.msra.mxu1 %v1807_v39 }
 0x4d1   :  { %v1293_v54 = vpop.f32.mrf.mxu1 }
 0x4d2   :  { %4617 = vset.pattern.permute.xlu1 %v4710_v6  ;;  %v1669_v6 = vld [vmem:[%s4030_s12 + $0x18] sm:$0xff]  ;;  %s4027_s12 = sld [smem:[%s5314_s0 + %s4719_s6]]   ;;  %s4723_s6 = smov 18  }
 0x4d3   :  { %v4338_v55 = vpop.f32.mrf.mxu1  ;;  %4359 = vmatprep.subr.mxu0 %v1669_v6 }
 0x4d4   :  { %4360 = vmatpush3.msra.mxu0 %v1669_v6  ;;  %v1805_v55 = vld [vmem:[%s4032_s20 + $0x8] sm:$0xff] }
 0x4d5   :  { %4361 = vmatprep.subr.mxu0 %v1668_v7 }
 0x4d6   :  { %4362 = vmatpush3.msra.mxu0 %v1668_v7 }
 0x4d7   :  { %4363 = vmatprep.subr.mxu0 %v1667_v8 }
 0x4d8   :  { %4364 = vmatpush3.msra.mxu0 %v1667_v8 }
 0x4d9   :  { %4365 = vmatprep.subr.mxu0 %v1666_v9 }
 0x4da   :  { %4366 = vmatpush3.msra.mxu0 %v1666_v9  ;;  %v4085_v9 = vld [vmem:[%s4027_s12] ss:$0 sm:$0xff]  ;;  %s4040_s12 = sld [smem:[%s5314_s0 + %s4723_s6]]   ;;  %s4736_s6 = smov 29  }
 0x4e0   :  { %v1456_v56 = vpop.f32.mrf.mxu1 }
 0x4e2   :  { %v4348_v57 = vpop.f32.mrf.mxu1 }
 0x4e4   :  { %v1619_v58 = vpop.f32.mrf.mxu1 }
 0x4e6   :  { %v4358_v59 = vpop.f32.mrf.mxu1 }
 0x4fc   :  { %v950_v60 = vpop.permute.xlu1 %949  ;;  %v945_v62 = vpop.permute.xlu0 %944 }
 0x4fd   :  { %v952_v63 = vmul.f32 %v950_v60, %v760_v41  ;;  %v947_v2 = vmul.f32 %v945_v62, %v597_v37 }
 0x4ff   :  { %963 = vrot.lane.b32.xlu0 %v952_v63, %s4713_s7  ;;  %959 = vrot.lane.b32.xlu1 %v947_v2, %s4714_s8 }
 0x501   :  { %v955_v3 = vpop.permute.xlu1 %954 }
 0x502   :  { %v957_v4 = vmul.f32 %v955_v3, %v923_v44  ;;  %v4084_v3 = vld [vmem:[%s4026_s5] ss:$0 sm:$0xff]  ;;  %s4035_s5 = sld [smem:[%s5314_s0 + %s4722_s21]]   ;;  %s4726_s21 = smov 19  }
 0x504   :  { %967 = vrot.lane.b32.xlu0 %v957_v4, %s4715_s9 }
 0x536   :  { %v1638_v10 = vpop.permute.xlu1 %1637 }
 0x537   :  { %v1640_v11 = vmul.f32 %v1638_v10, %v1293_v54  ;;  %v1806_v54 = vld [vmem:[%s4032_s20 + $0x10] sm:$0xff] }
 0x538   :  { %4372 = vmatprep.subr.mxu1 %v1806_v54 }
 0x539   :  { %1652 = vrot.lane.b32.xlu1 %v1640_v11, %s4714_s8  ;;  %4373 = vmatpush3.msra.mxu1 %v1806_v54 }
 0x53a   :  { %4374 = vmatprep.subr.mxu1 %v1805_v55 }
 0x53b   :  { %v1643_v12 = vpop.permute.xlu1 %1642  ;;  %4375 = vmatpush3.msra.mxu1 %v1805_v55 }
 0x53c   :  { %v1645_v13 = vmul.f32 %v1643_v12, %v1456_v56  ;;  %v1804_v56 = vld [vmem:[%s4032_s20] sm:$0xff]  ;;  %s4033_s20 = sld [smem:[%s5314_s0 + %s4721_s17]]   ;;  %s4725_s17 = smov 15  }
 0x53d   :  { %4376 = vmatprep.subr.mxu1 %v1804_v56 }
 0x53e   :  { %1656 = vrot.lane.b32.xlu1 %v1645_v13, %s4713_s7  ;;  %4377 = vmatpush3.msra.mxu1 %v1804_v56  ;;  %v4089_v56 = vld [vmem:[%s4035_s5] ss:$0 sm:$0xff]  ;;  %s4041_s5 = sld [smem:[%s5314_s0 + %s4726_s21]]   ;;  %s4732_s21 = smov 25  }
 0x540   :  { %v1648_v14 = vpop.permute.xlu1 %1647 }
 0x541   :  { %v1650_v15 = vmul.f32 %v1648_v14, %v1619_v58 }
 0x543   :  { %1660 = vrot.lane.b32.xlu0 %v1650_v15, %s4715_s9 }
 0x545   :  { %v940_v16 = vpop.permute.xlu1 %939 }
 0x546   :  { %v942_v19 = vmul.f32 %v940_v16, %v4932_v35  ;;  %v4081_v35 = vld [vmem:[%s4031_s16] ss:$0 sm:$0xff]  ;;  %s4994_s16 = sld [smem:[%s5314_s0 + %s4720_s13]]   ;;  %s4724_s13 = smov 14  }
 0x549   :  { %v1633_v18 = vpop.permute.xlu1 %1632 }
 0x54a   :  { %v1635_v27 = vmul.f32 %v1633_v18, %v4936_v50 }
 0x54c   :  { %v1929_v13 = vld [vmem:[%s4994_s16 + $0x78] sm:$0xff]  ;;  %v1928_v14 = vld [vmem:[%s4994_s16 + $0x70] sm:$0xff]  ;;  %v1927_v15 = vld [vmem:[%s4994_s16 + $0x68] sm:$0xff] }
 0x54d   :  { %4381 = vmatprep.subr.mxu0 %v1929_v13  ;;  %v1926_v16 = vld [vmem:[%s4994_s16 + $0x60] sm:$0xff]  ;;  %v1925_v18 = vld [vmem:[%s4994_s16 + $0x58] sm:$0xff] }
 0x571   :  { %v960_v20 = vpop.permute.xlu1 %959  ;;  %v964_v21 = vpop.permute.xlu0 %963 }
 0x572   :  { %v970_v22 = vsel %vm281_vm2, %v942_v19, %v960_v20  ;;  %v1924_v19 = vld [vmem:[%s4994_s16 + $0x50] sm:$0xff]  ;;  %v1923_v20 = vld [vmem:[%s4994_s16 + $0x48] sm:$0xff] }
 0x573   :  { %v972_v23 = vsel %vm971_vm7, %v970_v22, %v964_v21  ;;  %v1922_v21 = vld [vmem:[%s4994_s16 + $0x40] sm:$0xff]  ;;  %v1921_v22 = vld [vmem:[%s4994_s16 + $0x38] sm:$0xff] }
 0x576   :  { %v968_v24 = vpop.permute.xlu0 %967 }
 0x577   :  { %v974_v25 = vsel %vm973_vm8, %v972_v23, %v968_v24  ;;  %v1920_v23 = vld [vmem:[%s4994_s16 + $0x30] sm:$0xff]  ;;  %v1919_v24 = vld [vmem:[%s4994_s16 + $0x28] sm:$0xff] }
 0x578   :  { %4367 = vmatprep.mubr.msk.f32.mxu0 %vm142_vm0, %v974_v25  ;;  %v1918_v25 = vld [vmem:[%s4994_s16 + $0x20] sm:$0xff] }
 0x5ab   :  { %v1653_v26 = vpop.permute.xlu1 %1652 }
 0x5ac   :  { %v1663_v29 = vsel %vm281_vm2, %v1635_v27, %v1653_v26  ;;  %v1917_v26 = vld [vmem:[%s4994_s16 + $0x18] sm:$0xff]  ;;  %v1916_v27 = vld [vmem:[%s4994_s16 + $0x10] sm:$0xff] }
 0x5b0   :  { %v1657_v28 = vpop.permute.xlu1 %1656 }
 0x5b1   :  { %v1664_v30 = vsel %vm971_vm7, %v1663_v29, %v1657_v28  ;;  %v1915_v28 = vld [vmem:[%s4994_s16 + $0x8] sm:$0xff]  ;;  %v1914_v29 = vld [vmem:[%s4994_s16] sm:$0xff]  ;;  %s4036_s16 = sld [smem:[%s5314_s0 + %s4724_s13]]  }
 0x5b5   :  { %v1661_v31 = vpop.permute.xlu0 %1660 }
 0x5b6   :  { %v1665_v32 = vsel %vm973_vm8, %v1664_v30, %v1661_v31  ;;  %v4086_v30 = vld [vmem:[%s4033_s20] ss:$0 sm:$0xff]  ;;  %s4037_s20 = sld [smem:[%s5314_s0 + %s4725_s17]]  }
 0x5b7   :  { %4368 = vmatmul.mubr.msk.f32.vlgmr.msra.gmra.mxu0 %vm142_vm0, %v1665_v32  ;;  %s5269_s17 = sld [smem:[%s5314_s0 + %s4715_s9]]  }
 0x5b8   :  { %4382 = vmatpush3.msra.mxu0 %v1929_v13  ;;  %v2061_v13 = vld [vmem:[%s4040_s12 + $0x18] sm:$0xff] }
 0x5b9   :  { %4383 = vmatprep.subr.mxu0 %v1928_v14  ;;  %4416 = vmatprep.subr.mxu1 %v2061_v13 }
 0x5ba   :  { %4384 = vmatpush3.msra.mxu0 %v1928_v14  ;;  %v2060_v14 = vld [vmem:[%s4040_s12 + $0x10] sm:$0xff] }
 0x5bb   :  { %4385 = vmatprep.subr.mxu0 %v1927_v15 }
 0x5bc   :  { %4386 = vmatpush3.msra.mxu0 %v1927_v15  ;;  %v2059_v15 = vld [vmem:[%s4040_s12 + $0x8] sm:$0xff] }
 0x5bd   :  { %4387 = vmatprep.subr.mxu0 %v1926_v16 }
 0x5be   :  { %4388 = vmatpush3.msra.mxu0 %v1926_v16  ;;  %v2058_v16 = vld [vmem:[%s4040_s12] sm:$0xff]  ;;  %s4730_s12 = smov 17  }
 0x5bf   :  { %4389 = vmatprep.subr.mxu0 %v1925_v18  ;;  %s4039_s15 = sld [smem:[%s5314_s0 + %s4730_s12]]  }
 0x5c0   :  { %4390 = vmatpush3.msra.mxu0 %v1925_v18  ;;  %s4051_s12 = sld [smem:[%s5314_s0 + %s4736_s6]]  }
 0x5c1   :  { %4391 = vmatprep.subr.mxu0 %v1924_v19 }
 0x5c2   :  { %4392 = vmatpush3.msra.mxu0 %v1924_v19 }
 0x5c3   :  { %4393 = vmatprep.subr.mxu0 %v1923_v20 }
 0x5c4   :  { %4394 = vmatpush3.msra.mxu0 %v1923_v20 }
 0x5c5   :  { %4395 = vmatprep.subr.mxu0 %v1922_v21 }
 0x5c6   :  { %4396 = vmatpush3.msra.mxu0 %v1922_v21 }
 0x5c7   :  { %4397 = vmatprep.subr.mxu0 %v1921_v22 }
 0x5c8   :  { %4398 = vmatpush3.msra.mxu0 %v1921_v22 }
 0x5c9   :  { %4399 = vmatprep.subr.mxu0 %v1920_v23 }
 0x5ca   :  { %4400 = vmatpush3.msra.mxu0 %v1920_v23 }
 0x5cb   :  { %4401 = vmatprep.subr.mxu0 %v1919_v24 }
 0x5cc   :  { %4402 = vmatpush3.msra.mxu0 %v1919_v24 }
 0x5cd   :  { %4403 = vmatprep.subr.mxu0 %v1918_v25 }
 0x5ce   :  { %4404 = vmatpush3.msra.mxu0 %v1918_v25  ;;  %v4090_v25 = vld [vmem:[%s4036_s16] ss:$0 sm:$0xff] }
 0x5cf   :  { %4405 = vmatprep.subr.mxu0 %v1917_v26 }
 0x5d0   :  { %4406 = vmatpush3.msra.mxu0 %v1917_v26 }
 0x5d1   :  { %4407 = vmatprep.subr.mxu0 %v1916_v27 }
 0x5d2   :  { %4408 = vmatpush3.msra.mxu0 %v1916_v27 }
 0x5d3   :  { %4409 = vmatprep.subr.mxu0 %v1915_v28 }
 0x5d4   :  { %4410 = vmatpush3.msra.mxu0 %v1915_v28 }
 0x5d5   :  { %4411 = vmatprep.subr.mxu0 %v1914_v29 }
 0x5d6   :  { %4412 = vmatpush3.msra.mxu0 %v1914_v29 }
 0x5d7   :  { %4457 = vmatprep.subr.mxu0 %v4694_v34 }
 0x677   :  { %v4369_v36 = vpop.f32.mrf.mxu0 }
 0x678   :  { %v1755_v37 = vadd.f32 %v4369_v36, %v4081_v35 }
 0x679   :  { %v1749_v38 = vpop.f32.mrf.mxu0 }
 0x67a   :  { %v4967_v40 = vadd.f32 %v1755_v37, %v4747_v1  ;;  %v1750_v41 = vadd.f32 %v4081_v35, %v1749_v38 }
 0x67c   :  { %v4970_v42 = vadd.f32 %v1750_v41, %v4745_v0  ;;  %v1765_v43 = vsel %vm142_vm0, %v4967_v40, 0.0 }
 0x67d   :  { %1766 = vadd.xlane.f32.xlu0 %v1765_v43 }
 0x67e   :  { %v1762_v44 = vsel %vm142_vm0, %v4970_v42, 0.0 }
 0x67f   :  { %1763 = vadd.xlane.f32.xlu1 %v1762_v44 }
 0x706   :  { %v1767_v45 = vpop.xlane.xlu0 %1766 }
 0x707   :  { %v1769_v46 = vmul.f32 0.03125, %v1767_v45 }
 0x708   :  { %v1764_v47 = vpop.xlane.xlu1 %1763 }
 0x709   :  { %v1771_v48 = vsub.f32 %v4967_v40, %v1769_v46  ;;  %v1768_v49 = vmul.f32 0.03125, %v1764_v47 }
 0x70b   :  { %v1770_v1 = vsub.f32 %v4970_v42, %v1768_v49  ;;  %v1773_v50 = vmul.f32 %v1771_v48, %v1771_v48 }
 0x70d   :  { %v1777_v0 = vsel %vm142_vm0, %v1773_v50, 0.0  ;;  %v1772_v51 = vmul.f32 %v1770_v1, %v1770_v1 }
 0x70e   :  { %1778 = vadd.xlane.f32.xlu1 %v1777_v0 }
 0x70f   :  { %v1774_v52 = vsel %vm142_vm0, %v1772_v51, 0.0 }
 0x710   :  { %1775 = vadd.xlane.f32.xlu0 %v1774_v52 }
 0x797   :  { %v1779_v57 = vpop.xlane.xlu1 %1778 }
 0x798   :  { %v1781_v58 = vmul.f32 0.03125, %v1779_v57 }
 0x799   :  { %v1776_v59 = vpop.xlane.xlu0 %1775 }
 0x79a   :  { %v1783_v60 = vadd.f32 1e-05, %v1781_v58  ;;  %v1780_v62 = vmul.f32 0.03125, %v1776_v59 }
 0x79c   :  { %4647 = vrsqrt.f32 %v1783_v60  ;;  %v1782_v63 = vadd.f32 1e-05, %v1780_v62 }
 0x79e   :  { %4649 = vrsqrt.f32 %v1782_v63 }
 0x7a9   :  { %v4648_v2 = vpop.eup %4647 }
 0x7aa   :  { %v1787_v4 = vmul.f32 %v4648_v2, %v1771_v48 }
 0x7ab   :  { %v4650_v6 = vpop.eup %4649 }
 0x7ac   :  { %v1786_v7 = vmul.f32 %v4650_v6, %v1770_v1  ;;  %v1795_v8 = vmul.f32 %v4084_v3, %v1787_v4 }
 0x7ae   :  { %v1794_v10 = vmul.f32 %v4084_v3, %v1786_v7  ;;  %v1803_v12 = vadd.f32 %v4085_v9, %v1795_v8 }
 0x7b0   :  { %v1802_v11 = vadd.f32 %v4085_v9, %v1794_v10 }
 0x7b2   :  { %4378 = vmatprep.mubr.msk.f32.mxu1 %vm142_vm0, %v1802_v11 }
 0x7b3   :  { %4379 = vmatmul.mubr.msk.f32.vlgmr.msra.gmra.mxu1 %vm142_vm0, %v1803_v12 }
 0x7b4   :  { %4417 = vmatpush3.msra.mxu1 %v2061_v13 }
 0x7b5   :  { %4418 = vmatprep.subr.mxu1 %v2060_v14 }
 0x7b6   :  { %4419 = vmatpush3.msra.mxu1 %v2060_v14 }
 0x7b7   :  { %4420 = vmatprep.subr.mxu1 %v2059_v15 }
 0x7b8   :  { %4421 = vmatpush3.msra.mxu1 %v2059_v15 }
 0x7b9   :  { %4422 = vmatprep.subr.mxu1 %v2058_v16 }
 0x7ba   :  { %4423 = vmatpush3.msra.mxu1 %v2058_v16 }
 0x7bb   :  { %4427 = vmatprep.subr.mxu1 %v4694_v34 }
 0x873   :  { %v4380_v31 = vpop.f32.mrf.mxu1 }
 0x874   :  { %v1893_v32 = vadd.f32 %v4380_v31, %v4086_v30 }
 0x875   :  { %v1887_v35 = vpop.f32.mrf.mxu1 }
 0x876   :  { %v1899_v36 = vmul.f32 0.044715, %v1893_v32  ;;  %v1888_v37 = vadd.f32 %v4086_v30, %v1887_v35  ;;  %v1897_v39 = vmul.f32 0.5, %v1893_v32  ;;  %v4091_v30 = vld [vmem:[%s4037_s20] ss:$0 sm:$0xff] }
 0x878   :  { %v1901_v38 = vmul.f32 %v1899_v36, %v1893_v32  ;;  %v1898_v41 = vmul.f32 0.044715, %v1888_v37  ;;  %v1896_v51 = vmul.f32 0.5, %v1888_v37  ;;  %v4092_v36 = vld [vmem:[%s4041_s5] ss:$0 sm:$0xff]  ;;  %s4047_s5 = sld [smem:[%s5314_s0 + %s4732_s21]]  }
 0x87a   :  { %v1903_v43 = vmul.f32 %v1901_v38, %v1893_v32  ;;  %v1900_v44 = vmul.f32 %v1898_v41, %v1888_v37 }
 0x87c   :  { %v1905_v45 = vadd.f32 %v1903_v43, %v1893_v32  ;;  %v1902_v46 = vmul.f32 %v1900_v44, %v1888_v37 }
 0x87e   :  { %v1904_v47 = vadd.f32 %v1902_v46, %v1888_v37  ;;  %v1907_v48 = vmul.f32 0.7978846, %v1905_v45 }
 0x880   :  { %v1906_v49 = vmul.f32 0.7978846, %v1904_v47  ;;  %4651 = vtanh.f32 %v1907_v48 }
 0x882   :  { %4653 = vtanh.f32 %v1906_v49 }
 0x88d   :  { %v4652_v1 = vpop.eup %4651 }
 0x88e   :  { %v1911_v0 = vadd.f32 1.0, %v4652_v1 }
 0x88f   :  { %v4654_v50 = vpop.eup %4653 }
 0x890   :  { %v1910_v52 = vadd.f32 1.0, %v4654_v50  ;;  %v1913_v55 = vmul.f32 %v1911_v0, %v1897_v39 }
 0x892   :  { %v1912_v54 = vmul.f32 %v1910_v52, %v1896_v51 }
 0x894   :  { %4413 = vmatprep.mubr.f32.mxu0 %v1912_v54 }
 0x895   :  { %4414 = vmatmul.mubr.f32.vlgmr.msra.gmra.mxu0 %v1913_v55 }
 0x896   :  { %4459 = vmatprep.mubr.msk.f32.mxu0 %vm4695_vm1, %v4694_v34 }
 0x955   :  { %v4415_v57 = vpop.f32.mrf.mxu0 }
 0x956   :  { %v2009_v58 = vadd.f32 %v4415_v57, %v4089_v56 }
 0x957   :  { %v2003_v59 = vpop.f32.mrf.mxu0 }
 0x958   :  { %v5022_v60 = vadd.f32 %v2009_v58, %v4967_v40  ;;  %v2004_v62 = vadd.f32 %v4089_v56, %v2003_v59 }
 0x95a   :  { %v5025_v63 = vadd.f32 %v2004_v62, %v4970_v42  ;;  %v2019_v2 = vsel %vm142_vm0, %v5022_v60, 0.0 }
 0x95b   :  { %2020 = vadd.xlane.f32.xlu1 %v2019_v2 }
 0x95c   :  { %v2016_v3 = vsel %vm142_vm0, %v5025_v63, 0.0 }
 0x95d   :  { %2017 = vadd.xlane.f32.xlu0 %v2016_v3 }
 0x9e4   :  { %v2021_v4 = vpop.xlane.xlu1 %2020 }
 0x9e5   :  { %v2023_v6 = vmul.f32 0.03125, %v2021_v4 }
 0x9e6   :  { %v2018_v7 = vpop.xlane.xlu0 %2017 }
 0x9e7   :  { %v2025_v8 = vsub.f32 %v5022_v60, %v2023_v6  ;;  %v2022_v9 = vmul.f32 0.03125, %v2018_v7 }
 0x9e9   :  { %v2024_v40 = vsub.f32 %v5025_v63, %v2022_v9  ;;  %v2027_v10 = vmul.f32 %v2025_v8, %v2025_v8 }
 0x9eb   :  { %v2031_v42 = vsel %vm142_vm0, %v2027_v10, 0.0  ;;  %v2026_v11 = vmul.f32 %v2024_v40, %v2024_v40 }
 0x9ec   :  { %2032 = vadd.xlane.f32.xlu1 %v2031_v42 }
 0x9ed   :  { %v2028_v12 = vsel %vm142_vm0, %v2026_v11, 0.0 }
 0x9ee   :  { %2029 = vadd.xlane.f32.xlu0 %v2028_v12 }
 0xa75   :  { %v2033_v18 = vpop.xlane.xlu1 %2032 }
 0xa76   :  { %v2035_v19 = vmul.f32 0.03125, %v2033_v18 }
 0xa77   :  { %v2030_v20 = vpop.xlane.xlu0 %2029 }
 0xa78   :  { %v2037_v21 = vadd.f32 1e-05, %v2035_v19  ;;  %v2034_v22 = vmul.f32 0.03125, %v2030_v20 }
 0xa7a   :  { %4655 = vrsqrt.f32 %v2037_v21  ;;  %v2036_v23 = vadd.f32 1e-05, %v2034_v22 }
 0xa7c   :  { %4657 = vrsqrt.f32 %v2036_v23 }
 0xa87   :  { %v4656_v24 = vpop.eup %4655 }
 0xa88   :  { %v2041_v26 = vmul.f32 %v4656_v24, %v2025_v8 }
 0xa89   :  { %v4658_v27 = vpop.eup %4657 }
 0xa8a   :  { %v2040_v28 = vmul.f32 %v4658_v27, %v2024_v40  ;;  %v2049_v29 = vmul.f32 %v4090_v25, %v2041_v26 }
 0xa8c   :  { %v2048_v31 = vmul.f32 %v4090_v25, %v2040_v28  ;;  %v2057_v35 = vadd.f32 %v4091_v30, %v2049_v29 }
 0xa8e   :  { %v2056_v32 = vadd.f32 %v4091_v30, %v2048_v31 }
 0xa90   :  { %4424 = vmatprep.mubr.msk.f32.mxu1 %vm142_vm0, %v2056_v32 }
 0xa91   :  { %4425 = vmatmul.mubr.msk.f32.vlgmr.msra.gmra.mxu1 %vm142_vm0, %v2057_v35 }
 0xa92   :  { %4429 = vmatprep.mubr.msk.f32.mxu1 %vm4695_vm1, %v4694_v34 }
 0xb51   :  { %v4426_v37 = vpop.f32.mrf.mxu1 }
 0xb52   :  { %v5052_v38 = vadd.f32 %v4426_v37, %v4092_v36 }
 0xb53   :  { %v2141_v41 = vpop.f32.mrf.mxu1 }
 0xb54   :  { %v5054_v43 = vadd.f32 %v4092_v36, %v2141_v41 }
 0xb56   :  { %2233 = vrot.lane.b32.xlu1 %v5054_v43, %s4704_s29  ;;  %2151 = vrot.lane.b32.xlu0 %v5054_v43, %s4698_s23 }
 0xb5a   :  { %2314 = vrot.lane.b32.xlu0 %v5054_v43, %s4697_s22 }
 0xbc8   :  { %v2152_v44 = vpop.permute.xlu0 %2151  ;;  %v2234_v45 = vpop.permute.xlu1 %2233 }
 0xbc9   :  { %4428 = vmatpush3.xpose.msk.msra.mxu1 %vm281_vm2, %v2152_v44 }
 0xbca   :  { %4432 = vmatprep.subr.mxu1 %v4694_v34 }
 0xbcc   :  { %4430 = vmatmul.mubr.msk.f32.vlgmr.msra.gmra.mxu1 %vm281_vm2, %v5054_v43  ;;  %v2315_v56 = vpop.permute.xlu0 %2314 }
 0xbcd   :  { %4433 = vmatpush3.msra.mxu1 %v2234_v45  ;;  %4434 = vmatprep.mubr.msk.f32.mxu1 %vm4695_vm1, %v4694_v34 }
 0xbce   :  { %4437 = vmatprep.subr.mxu1 %v4694_v34 }
 0xc8c   :  { %v2223_v46 = vpop.f32.mrf.mxu1 }
 0xc8d   :  { %v2224_v47 = vadd.f32 %v2223_v46, %v4847_v61 }
 0xc8e   :  { %v4431_v48 = vpop.f32.mrf.mxu1 }
 0xc8f   :  { %v2227_v49 = vsel %vm281_vm2, %v2224_v47, -inf }
 0xc90   :  { %2228 = vmax.xlane.f32.xlu1 %v2227_v49 }
 0xca1   :  { %2312 = vrot.lane.b32.xlu1 %v5054_v43, %s4699_s24 }
 0xca5   :  { %2396 = vrot.lane.b32.xlu1 %v5054_v43, %s4705_s30 }
 0xca9   :  { %2477 = vrot.lane.b32.xlu1 %v5054_v43, %s4701_s26 }
 0xcad   :  { %2475 = vrot.lane.b32.xlu1 %v5054_v43, %s4700_s25 }
 0xcb1   :  { %2640 = vrot.lane.b32.xlu1 %v5054_v43, %s4703_s28 }
 0xcb5   :  { %2638 = vrot.lane.b32.xlu1 %v5054_v43, %s4702_s27 }
 0xcb9   :  { %2842 = vrot.lane.b32.xlu1 %v5052_v38, %s4698_s23 }
 0xcbd   :  { %3005 = vrot.lane.b32.xlu1 %v5052_v38, %s4697_s22  ;;  %s4727_s22 = smov 20  }
 0xcc1   :  { %3003 = vrot.lane.b32.xlu1 %v5052_v38, %s4699_s24 }
 0xcc5   :  { %3166 = vrot.lane.b32.xlu1 %v5052_v38, %s4700_s25  ;;  %s4042_s25 = sld [smem:[%s5314_s0 + %s4727_s22]]   ;;  %s4733_s22 = smov 28  }
 0xcc9   :  { %3331 = vrot.lane.b32.xlu1 %v5052_v38, %s4703_s28 }
 0xccd   :  { %3329 = vrot.lane.b32.xlu1 %v5052_v38, %s4702_s27 }
 0xd19   :  { %v2229_v1 = vpop.xlane.xlu1 %2228 }
 0xd1a   :  { %v2230_v50 = vsub.f32 %v2224_v47, %v2229_v1 }
 0xd1c   :  { %v2231_v0 = vmul.f32 1.442695, %v2230_v50 }
 0xd1d   :  { %v2313_v51 = vpop.permute.xlu1 %2312 }
 0xd1e   :  { %4659 = vpow2.f32 %v2231_v0 }
 0xd21   :  { %v2397_v52 = vpop.permute.xlu1 %2396 }
 0xd25   :  { %v5095_v39 = vpop.permute.xlu1 %2477 }
 0xd29   :  { %v5097_v54 = vpop.permute.xlu1 %2475 }
 0xd2b   :  { %v5099_v55 = vpop.eup %4659 }
 0xd2c   :  { %4435 = vmatmul.mubr.msk.f32.vlgmr.msra.gmra.mxu1 %vm281_vm2, %v5099_v55 }
 0xd2d   :  { %4438 = vmatpush3.xpose.msk.msra.mxu1 %vm281_vm2, %v2315_v56  ;;  %v2641_v57 = vpop.permute.xlu1 %2640  ;;  %4439 = vmatprep.mubr.msk.f32.mxu1 %vm4695_vm1, %v4694_v34 }
 0xd2e   :  { %4458 = vmatpush3.xpose.msk.msra.mxu0 %vm281_vm2, %v2641_v57  ;;  %4442 = vmatprep.subr.mxu1 %v4694_v34 }
 0xd2f   :  { %4467 = vmatprep.subr.mxu0 %v4694_v34 }
 0xd30   :  { %4440 = vmatmul.mubr.msk.f32.vlgmr.msra.gmra.mxu1 %vm281_vm2, %v2313_v51 }
 0xd31   :  { %4443 = vmatpush3.msra.mxu1 %v2397_v52  ;;  %v2639_v58 = vpop.permute.xlu1 %2638  ;;  %4444 = vmatprep.mubr.msk.f32.mxu1 %vm4695_vm1, %v4694_v34 }
 0xd32   :  { %4460 = vmatmul.mubr.msk.f32.vlgmr.msra.gmra.mxu0 %vm281_vm2, %v2639_v58  ;;  %4447 = vmatprep.subr.mxu1 %v4694_v34 }
 0xd33   :  { %4469 = vmatprep.mubr.msk.f32.mxu0 %vm4695_vm1, %v4694_v34 }
 0xd35   :  { %v2843_v59 = vpop.permute.xlu1 %2842 }
 0xd36   :  { %4468 = vmatpush3.xpose.msk.msra.mxu0 %vm281_vm2, %v2843_v59 }
 0xd37   :  { %4477 = vmatprep.subr.mxu0 %v4694_v34 }
 0xd39   :  { %4470 = vmatmul.mubr.msk.f32.vlgmr.msra.gmra.mxu0 %vm281_vm2, %v5052_v38  ;;  %v3006_v62 = vpop.permute.xlu1 %3005 }
 0xd3a   :  { %4478 = vmatpush3.xpose.msk.msra.mxu0 %vm281_vm2, %v3006_v62  ;;  %4479 = vmatprep.mubr.msk.f32.mxu0 %vm4695_vm1, %v4694_v34 }
 0xd3b   :  { %4487 = vmatprep.subr.mxu0 %v4694_v34 }
 0xd3d   :  { %v3004_v2 = vpop.permute.xlu1 %3003 }
 0xd3e   :  { %4480 = vmatmul.mubr.msk.f32.vlgmr.msra.gmra.mxu0 %vm281_vm2, %v3004_v2 }
 0xd3f   :  { %4489 = vmatprep.mubr.msk.f32.mxu0 %vm4695_vm1, %v4694_v34 }
 0xd41   :  { %v3167_v21 = vpop.permute.xlu1 %3166 }
 0xd45   :  { %v3332_v26 = vpop.permute.xlu1 %3331 }
 0xd49   :  { %v3330_v27 = vpop.permute.xlu1 %3329 }
 0xdec   :  { %v5127_v3 = vpop.f32.mrf.mxu1 }
 0xdee   :  { %v4436_v4 = vpop.f32.mrf.mxu1 }
 0xdf0   :  { %v2386_v6 = vpop.f32.mrf.mxu1 }
 0xdf1   :  { %v2387_v7 = vadd.f32 %v2386_v6, %v4847_v61 }
 0xdf2   :  { %v4441_v8 = vpop.f32.mrf.mxu1  ;;  %v2712_v9 = vpop.f32.mrf.mxu0 }
 0xdf3   :  { %v2390_v40 = vsel %vm281_vm2, %v2387_v7, -inf  ;;  %v2713_v16 = vadd.f32 %v2712_v9, %v4847_v61 }
 0xdf4   :  { %v4461_v10 = vpop.f32.mrf.mxu0  ;;  %2391 = vmax.xlane.f32.xlu0 %v2390_v40 }
 0xdf5   :  { %v2716_v19 = vsel %vm281_vm2, %v2713_v16, -inf }
 0xdf9   :  { %v2914_v42 = vpop.f32.mrf.mxu0 }
 0xdfa   :  { %v2915_v11 = vadd.f32 %v2914_v42, %v4857_v17 }
 0xdfb   :  { %v4471_v12 = vpop.f32.mrf.mxu0 }
 0xdfc   :  { %v2918_v13 = vsel %vm281_vm2, %v2915_v11, -inf }
 0xdfd   :  { %2919 = vmax.xlane.f32.xlu1 %v2918_v13 }
 0xdfe   :  { %v3077_v14 = vpop.f32.mrf.mxu0 }
 0xdff   :  { %v3078_v18 = vadd.f32 %v3077_v14, %v4857_v17 }
 0xe00   :  { %v4481_v15 = vpop.f32.mrf.mxu0 }
 0xe01   :  { %v3081_v20 = vsel %vm281_vm2, %v3078_v18, -inf }
 0xe0a   :  { %3168 = vrot.lane.b32.xlu0 %v5052_v38, %s4701_s26  ;;  %s4728_s26 = smov 21  }
 0xe29   :  { %2717 = vmax.xlane.f32.xlu0 %v2716_v19 }
 0xe2d   :  { %3082 = vmax.xlane.f32.xlu0 %v3081_v20 }
 0xe7d   :  { %v2392_v22 = vpop.xlane.xlu0 %2391 }
 0xe7e   :  { %v2393_v23 = vsub.f32 %v2387_v7, %v2392_v22 }
 0xe80   :  { %v2394_v24 = vmul.f32 1.442695, %v2393_v23 }
 0xe81   :  { %v3169_v25 = vpop.permute.xlu0 %3168 }
 0xe82   :  { %4661 = vpow2.f32 %v2394_v24  ;;  %4488 = vmatpush3.xpose.msk.msra.mxu0 %vm281_vm2, %v3169_v25 }
 0xe83   :  { %4497 = vmatprep.subr.mxu0 %v4694_v34 }
 0xe85   :  { %4490 = vmatmul.mubr.msk.f32.vlgmr.msra.gmra.mxu0 %vm281_vm2, %v3167_v21 }
 0xe86   :  { %4498 = vmatpush3.xpose.msk.msra.mxu0 %vm281_vm2, %v3332_v26  ;;  %4499 = vmatprep.mubr.msk.f32.mxu0 %vm4695_vm1, %v4694_v34 }
 0xe89   :  { %4500 = vmatmul.mubr.msk.f32.vlgmr.msra.gmra.mxu0 %vm281_vm2, %v3330_v27 }
 0xe8f   :  { %v4662_v28 = vpop.eup %4661 }
 0xe90   :  { %4445 = vmatmul.mubr.msk.f32.vlgmr.msra.gmra.mxu1 %vm281_vm2, %v4662_v28 }
 0xe91   :  { %4448 = vmatpush3.xpose.msk.msra.mxu1 %vm281_vm2, %v5095_v39  ;;  %4449 = vmatprep.mubr.msk.f32.mxu1 %vm4695_vm1, %v4694_v34 }
 0xe92   :  { %4452 = vmatprep.subr.mxu1 %v4694_v34 }
 0xe94   :  { %4450 = vmatmul.mubr.msk.f32.vlgmr.msra.gmra.mxu1 %vm281_vm2, %v5097_v54 }
 0xe95   :  { %4454 = vmatprep.mubr.msk.f32.mxu1 %vm4695_vm1, %v4694_v34 }
 0xf45   :  { %v3240_v29 = vpop.f32.mrf.mxu0 }
 0xf46   :  { %v3241_v30 = vadd.f32 %v3240_v29, %v4857_v17 }
 0xf47   :  { %v4491_v31 = vpop.f32.mrf.mxu0 }
 0xf48   :  { %v3244_v32 = vsel %vm281_vm2, %v3241_v30, -inf }
 0xf49   :  { %3245 = vmax.xlane.f32.xlu1 %v3244_v32  ;;  %v3403_v35 = vpop.f32.mrf.mxu0 }
 0xf4a   :  { %v3404_v36 = vadd.f32 %v3403_v35, %v4857_v17  ;;  %v2920_v17 = vpop.xlane.xlu1 %2919 }
 0xf4b   :  { %v4501_v37 = vpop.f32.mrf.mxu0  ;;  %v2921_v1 = vsub.f32 %v2915_v11, %v2920_v17 }
 0xf4c   :  { %v3407_v41 = vsel %vm281_vm2, %v3404_v36, -inf }
 0xf4d   :  { %3408 = vmax.xlane.f32.xlu0 %v3407_v41  ;;  %v2922_v50 = vmul.f32 1.442695, %v2921_v1 }
 0xf4f   :  { %4663 = vpow2.f32 %v2922_v50 }
 0xf50   :  { %v5160_v44 = vpop.f32.mrf.mxu1 }
 0xf52   :  { %v4446_v45 = vpop.f32.mrf.mxu1 }
 0xf54   :  { %v2549_v46 = vpop.f32.mrf.mxu1 }
 0xf55   :  { %v2550_v47 = vadd.f32 %v2549_v46, %v4847_v61  ;;  %v2718_v61 = vpop.xlane.xlu0 %2717 }
 0xf56   :  { %v4451_v48 = vpop.f32.mrf.mxu1  ;;  %v2719_v0 = vsub.f32 %v2713_v16, %v2718_v61 }
 0xf57   :  { %v2553_v49 = vsel %vm281_vm2, %v2550_v47, -inf }
 0xf58   :  { %2554 = vmax.xlane.f32.xlu1 %v2553_v49  ;;  %v2720_v51 = vmul.f32 1.442695, %v2719_v0 }
 0xf59   :  { %v3083_v52 = vpop.xlane.xlu0 %3082 }
 0xf5a   :  { %4665 = vpow2.f32 %v2720_v51  ;;  %v3084_v39 = vsub.f32 %v3078_v18, %v3083_v52 }
 0xf5c   :  { %v4664_v54 = vpop.eup %4663  ;;  %v3085_v56 = vmul.f32 1.442695, %v3084_v39 }
 0xf5d   :  { %v3000_v57 = vsel %vm281_vm2, %v4664_v54, 0.0 }
 0xf5e   :  { %4667 = vpow2.f32 %v3085_v56  ;;  %v3534_v56 = vld [vmem:[%s4042_s25 + $0x10] sm:$0xff] }
 0xf63   :  { %2722 = vrot.lane.b32.xlu0 %v5054_v43, %s4707_s2 }
 0xf67   :  { %3250 = vrot.lane.b32.xlu0 %v5052_v38, %s4706_s1  ;;  %v4666_v58 = vpop.eup %4665 }
 0xf68   :  { %v2798_v59 = vsel %vm281_vm2, %v4666_v58, 0.0 }
 0xf69   :  { %2559 = vrot.lane.b32.xlu1 %v5054_v43, %s4706_s1  ;;  %v2309_v43 = vsel %vm281_vm2, %v5099_v55, 0.0 }
 0xf6b   :  { %v4668_v62 = vpop.eup %4667 }
 0xf6c   :  { %v3163_v2 = vsel %vm281_vm2, %v4668_v62, 0.0 }
 0xf6d   :  { %2924 = vrot.lane.b32.xlu1 %v5052_v38, %s4704_s29  ;;  %s4043_s29 = sld [smem:[%s5314_s0 + %s4728_s26]]   ;;  %s4734_s26 = smov 26  }
 0xf71   :  { %3087 = vrot.lane.b32.xlu1 %v5052_v38, %s4705_s30  ;;  %s4729_s30 = smov 22  }
 0xf75   :  { %3413 = vrot.lane.b32.xlu1 %v5052_v38, %s4707_s2  ;;  %v2472_v38 = vsel %vm281_vm2, %v4662_v28, 0.0 }
 0xf86   :  { %2310 = vadd.xlane.f32.xlu0 %v2309_v43 }
 0xf8a   :  { %3001 = vadd.xlane.f32.xlu0 %v3000_v57 }
 0xf8e   :  { %2799 = vadd.xlane.f32.xlu0 %v2798_v59  ;;  %v3533_v59 = vld [vmem:[%s4042_s25 + $0x8] sm:$0xff] }
 0xf99   :  { %2473 = vadd.xlane.f32.xlu1 %v2472_v38 }
 0xf9d   :  { %3164 = vadd.xlane.f32.xlu1 %v3163_v2  ;;  %v3532_v2 = vld [vmem:[%s4042_s25] sm:$0xff] }
 0xfd2   :  { %v3246_v4 = vpop.xlane.xlu1 %3245 }
 0xfd3   :  { %v3247_v55 = vsub.f32 %v3241_v30, %v3246_v4 }
 0xfd5   :  { %v3248_v6 = vmul.f32 1.442695, %v3247_v55 }
 0xfd6   :  { %v3409_v7 = vpop.xlane.xlu0 %3408 }
 0xfd7   :  { %4669 = vpow2.f32 %v3248_v6  ;;  %v3410_v8 = vsub.f32 %v3404_v36, %v3409_v7 }
 0xfd9   :  { %v3411_v42 = vmul.f32 1.442695, %v3410_v8 }
 0xfda   :  { %v2723_v15 = vpop.permute.xlu0 %2722 }
 0xfde   :  { %v3251_v22 = vpop.permute.xlu0 %3250 }
 0xfe1   :  { %v2555_v9 = vpop.xlane.xlu1 %2554 }
 0xfe2   :  { %v2556_v40 = vsub.f32 %v2550_v47, %v2555_v9 }
 0xfe4   :  { %v4670_v10 = vpop.eup %4669  ;;  %v2557_v11 = vmul.f32 1.442695, %v2556_v40 }
 0xfe5   :  { %v2560_v12 = vpop.permute.xlu1 %2559  ;;  %v3326_v13 = vsel %vm281_vm2, %v4670_v10, 0.0 }
 0xfe6   :  { %4671 = vpow2.f32 %v2557_v11  ;;  %3327 = vadd.xlane.f32.xlu1 %v3326_v13  ;;  %4453 = vmatpush3.msra.mxu1 %v2560_v12 }
 0xfe7   :  { %4462 = vmatprep.subr.mxu1 %v4694_v34  ;;  %4673 = vpow2.f32 %v3411_v42 }
 0xfe9   :  { %v2925_v19 = vpop.permute.xlu1 %2924 }
 0xfed   :  { %v3088_v21 = vpop.permute.xlu1 %3087 }
 0xff1   :  { %v3414_v23 = vpop.permute.xlu1 %3413 }
 0xff3   :  { %v4672_v14 = vpop.eup %4671 }
 0xff4   :  { %4455 = vmatmul.mubr.msk.f32.vlgmr.msra.gmra.mxu1 %vm281_vm2, %v4672_v14  ;;  %v2635_v16 = vsel %vm281_vm2, %v4672_v14, 0.0  ;;  %v4674_v18 = vpop.eup %4673 }
 0xff5   :  { %4463 = vmatpush3.msra.mxu1 %v2723_v15  ;;  %2636 = vadd.xlane.f32.xlu0 %v2635_v16  ;;  %v3489_v20 = vsel %vm281_vm2, %v4674_v18, 0.0 }
 0xff6   :  { %4464 = vmatprep.mubr.msk.f32.mxu1 %vm4695_vm1, %v4694_v34  ;;  %4472 = vmatprep.subr.mxu1 %v4694_v34 }
 0xff8   :  { %4465 = vmatmul.mubr.msk.f32.vlgmr.msra.gmra.mxu1 %vm281_vm2, %v4666_v58 }
 0xff9   :  { %4473 = vmatpush3.msra.mxu1 %v2925_v19  ;;  %3490 = vadd.xlane.f32.xlu0 %v3489_v20 }
 0xffa   :  { %4474 = vmatprep.mubr.msk.f32.mxu1 %vm4695_vm1, %v4694_v34  ;;  %4482 = vmatprep.subr.mxu1 %v4694_v34 }
 0xffc   :  { %4475 = vmatmul.mubr.msk.f32.vlgmr.msra.gmra.mxu1 %vm281_vm2, %v4664_v54  ;;  %v3535_v54 = vld [vmem:[%s4042_s25 + $0x18] sm:$0xff]  ;;  %s4050_s25 = sld [smem:[%s5314_s0 + %s4733_s22]]  }
 0xffd   :  { %4483 = vmatpush3.msra.mxu1 %v3088_v21  ;;  %4484 = vmatprep.mubr.msk.f32.mxu1 %vm4695_vm1, %v4694_v34 }
 0xffe   :  { %4492 = vmatprep.subr.mxu1 %v4694_v34  ;;  %4507 = vmatprep.subr.mxu0 %v3535_v54 }
 0xfff   :  { %4508 = vmatpush3.msra.mxu0 %v3535_v54 }
0x1000   :  { %4485 = vmatmul.mubr.msk.f32.vlgmr.msra.gmra.mxu1 %vm281_vm2, %v4668_v62  ;;  %4509 = vmatprep.subr.mxu0 %v3534_v56 }
0x1001   :  { %4493 = vmatpush3.msra.mxu1 %v3251_v22  ;;  %4494 = vmatprep.mubr.msk.f32.mxu1 %vm4695_vm1, %v4694_v34 }
0x1002   :  { %4502 = vmatprep.subr.mxu1 %v4694_v34  ;;  %4510 = vmatpush3.msra.mxu0 %v3534_v56 }
0x1003   :  { %4511 = vmatprep.subr.mxu0 %v3533_v59 }
0x1004   :  { %4495 = vmatmul.mubr.msk.f32.vlgmr.msra.gmra.mxu1 %vm281_vm2, %v4670_v10  ;;  %4512 = vmatpush3.msra.mxu0 %v3533_v59 }
0x1005   :  { %4503 = vmatpush3.msra.mxu1 %v3414_v23  ;;  %4504 = vmatprep.mubr.msk.f32.mxu1 %vm4695_vm1, %v4694_v34 }
0x1006   :  { %4513 = vmatprep.subr.mxu0 %v3532_v2 }
0x1007   :  { %4514 = vmatpush3.msra.mxu0 %v3532_v2  ;;  %v3794_v2 = vld [vmem:[%s5269_s17 + $0x70] sm:$0xff] }
0x1008   :  { %4505 = vmatmul.mubr.msk.f32.vlgmr.msra.gmra.mxu1 %vm281_vm2, %v4674_v18 }
0x100f   :  { %v2311_v24 = vpop.xlane.xlu0 %2310 }
0x1013   :  { %v3002_v25 = vpop.xlane.xlu0 %3001 }
0x1017   :  { %v2800_v27 = vpop.xlane.xlu0 %2799 }
0x1022   :  { %v2474_v26 = vpop.xlane.xlu1 %2473 }
0x1023   :  { %v2801_v29 = vsel %vm930_vm4, %v2311_v24, %v2474_v26 }
0x1026   :  { %v3165_v28 = vpop.xlane.xlu1 %3164 }
0x1027   :  { %v3492_v36 = vsel %vm930_vm4, %v3002_v25, %v3165_v28 }
0x106f   :  { %v3328_v31 = vpop.xlane.xlu1 %3327 }
0x1070   :  { %v3493_v37 = vsel %vm932_vm5, %v3492_v36, %v3328_v31 }
0x107e   :  { %v2637_v30 = vpop.xlane.xlu0 %2636 }
0x107f   :  { %v2802_v32 = vsel %vm932_vm5, %v2801_v29, %v2637_v30 }
0x1080   :  { %v2803_v35 = vsel %vm934_vm6, %v2802_v32, %v2800_v27 }
0x1081   :  { %4675 = vrcp.f32 %v2803_v35 }
0x1082   :  { %v3491_v41 = vpop.xlane.xlu0 %3490 }
0x1083   :  { %v3494_v45 = vsel %vm934_vm6, %v3493_v37, %v3491_v41 }
0x1084   :  { %4677 = vrcp.f32 %v3494_v45 }
0x108e   :  { %v4676_v46 = vpop.eup %4675 }
0x108f   :  { %2817 = vperm.xlu0 %4618, %v4676_v46   ;;  %2812 = vperm.xlu1 %4617, %v4676_v46  }
0x1091   :  { %v4678_v47 = vpop.eup %4677 }
0x1093   :  { %3503 = vperm.xlu1 %4617, %v4678_v47   ;;  %4622 = vset.pattern.permute.xlu0 %v4711_v33 }
0x1097   :  { %4619 = vset.pattern.permute.xlu1 %v4709_v5 }
0x1098   :  { %3508 = vperm.xlu1 %4619, %v4678_v47  }
0x109c   :  { %4620 = vset.pattern.permute.xlu1 %v4711_v33 }
0x109d   :  { %2822 = vperm.xlu1 %4620, %v4676_v46  }
0x10a1   :  { %3513 = vperm.xlu1 %4620, %v4678_v47  }
0x10a5   :  { %4621 = vset.pattern.permute.xlu1 %v4712_v53 }
0x10a6   :  { %3498 = vperm.xlu1 %4621, %v4678_v47  }
0x10aa   :  { %2807 = vperm.xlu1 %4621, %v4676_v46  }
0x10b4   :  { %v2631_v48 = vpop.f32.mrf.mxu1 }
0x10b6   :  { %v4456_v49 = vpop.f32.mrf.mxu1 }
0x10b8   :  { %v2794_v17 = vpop.f32.mrf.mxu1 }
0x10ba   :  { %v4466_v1 = vpop.f32.mrf.mxu1 }
0x10bc   :  { %v2996_v61 = vpop.f32.mrf.mxu1 }
0x10be   :  { %v4476_v50 = vpop.f32.mrf.mxu1 }
0x10c0   :  { %v3159_v0 = vpop.f32.mrf.mxu1 }
0x10c2   :  { %v4486_v51 = vpop.f32.mrf.mxu1 }
0x10c4   :  { %v3322_v52 = vpop.f32.mrf.mxu1 }
0x10c6   :  { %v4496_v39 = vpop.f32.mrf.mxu1 }
0x10c8   :  { %v3485_v5 = vpop.f32.mrf.mxu1 }
0x10ca   :  { %v4506_v43 = vpop.f32.mrf.mxu1 }
0x10cb   :  { %v4122_v43 = vld [vmem:[%s4038_s11] ss:$0 sm:$0xff] }
0x110a   :  { %v2813_v33 = vpop.permute.xlu1 %2812  ;;  %v2818_v57 = vpop.permute.xlu0 %2817 }
0x110b   :  { %v2815_v53 = vmul.f32 %v2813_v33, %v5160_v44  ;;  %v2820_v38 = vmul.f32 %v2818_v57, %v2631_v48 }
0x110d   :  { %2827 = vrot.lane.b32.xlu1 %v2815_v53, %s4714_s8  ;;  %v4123_v53 = vld [vmem:[%s4039_s15] ss:$0 sm:$0xff] }
0x110e   :  { %v3504_v58 = vpop.permute.xlu1 %3503 }
0x110f   :  { %v3506_v62 = vmul.f32 %v3504_v58, %v3159_v0 }
0x1111   :  { %2831 = vrot.lane.b32.xlu1 %v2820_v38, %s4713_s7  ;;  %3518 = vrot.lane.b32.xlu0 %v3506_v62, %s4714_s8  ;;  %s4044_s8 = sld [smem:[%s5314_s0 + %s4729_s30]]   ;;  %v3795_v62 = vld [vmem:[%s5269_s17 + $0x78] sm:$0xff]  ;;  %s4735_s30 = smov 27  }
0x1112   :  { %4529 = vmatprep.subr.mxu0 %v3795_v62 }
0x1113   :  { %v3509_v44 = vpop.permute.xlu1 %3508 }
0x1114   :  { %v3511_v4 = vmul.f32 %v3509_v44, %v3322_v52  ;;  %v3793_v44 = vld [vmem:[%s5269_s17 + $0x68] sm:$0xff] }
0x1116   :  { %3522 = vrot.lane.b32.xlu0 %v3511_v4, %s4713_s7  ;;  %v3792_v4 = vld [vmem:[%s5269_s17 + $0x60] sm:$0xff] }
0x1117   :  { %v3673_v48 = vld [vmem:[%s4044_s8 + $0x18] sm:$0xff]  ;;  %v3672_v49 = vld [vmem:[%s4044_s8 + $0x10] sm:$0xff]  ;;  %v3670_v1 = vld [vmem:[%s4044_s8] sm:$0xff] }
0x1118   :  { %v2823_v55 = vpop.permute.xlu1 %2822  ;;  %4518 = vmatprep.subr.mxu1 %v3673_v48 }
0x1119   :  { %v2825_v6 = vmul.f32 %v2823_v55, %v2794_v17  ;;  %4519 = vmatpush3.msra.mxu1 %v3673_v48  ;;  %v3671_v17 = vld [vmem:[%s4044_s8 + $0x8] sm:$0xff]  ;;  %v3791_v55 = vld [vmem:[%s5269_s17 + $0x58] sm:$0xff]  ;;  %s4049_s8 = sld [smem:[%s5314_s0 + %s4735_s30]]  }
0x111a   :  { %4520 = vmatprep.subr.mxu1 %v3672_v49 }
0x111b   :  { %2835 = vrot.lane.b32.xlu1 %v2825_v6, %s4715_s9  ;;  %4521 = vmatpush3.msra.mxu1 %v3672_v49  ;;  %v3790_v6 = vld [vmem:[%s5269_s17 + $0x50] sm:$0xff] }
0x111c   :  { %v3514_v7 = vpop.permute.xlu1 %3513  ;;  %4522 = vmatprep.subr.mxu1 %v3671_v17 }
0x111d   :  { %v3516_v8 = vmul.f32 %v3514_v7, %v3485_v5  ;;  %4523 = vmatpush3.msra.mxu1 %v3671_v17  ;;  %v3789_v7 = vld [vmem:[%s5269_s17 + $0x48] sm:$0xff] }
0x111e   :  { %4524 = vmatprep.subr.mxu1 %v3670_v1 }
0x111f   :  { %3526 = vrot.lane.b32.xlu1 %v3516_v8, %s4715_s9  ;;  %4525 = vmatpush3.msra.mxu1 %v3670_v1  ;;  %v3788_v8 = vld [vmem:[%s5269_s17 + $0x40] sm:$0xff]  ;;  %s4731_s9 = smov 23  }
0x1120   :  { %s4045_s20 = sld [smem:[%s5314_s0 + %s4731_s9]]  }
0x1121   :  { %v3499_v9 = vpop.permute.xlu1 %3498 }
0x1122   :  { %v3501_v16 = vmul.f32 %v3499_v9, %v2996_v61  ;;  %v3787_v9 = vld [vmem:[%s5269_s17 + $0x38] sm:$0xff] }
0x1125   :  { %v2808_v40 = vpop.permute.xlu1 %2807 }
0x1126   :  { %v2810_v12 = vmul.f32 %v2808_v40, %v5127_v3  ;;  %v4119_v3 = vld [vmem:[%s4043_s29] ss:$0 sm:$0xff]  ;;  %v3786_v40 = vld [vmem:[%s5269_s17 + $0x30] sm:$0xff]  ;;  %s4048_s29 = sld [smem:[%s5314_s0 + %s4734_s26]]  }
0x117f   :  { %v2828_v10 = vpop.permute.xlu1 %2827 }
0x1180   :  { %v2838_v13 = vsel %vm281_vm2, %v2810_v12, %v2828_v10  ;;  %v3785_v10 = vld [vmem:[%s5269_s17 + $0x28] sm:$0xff]  ;;  %v3782_v12 = vld [vmem:[%s5269_s17 + $0x10] sm:$0xff] }
0x1183   :  { %v3519_v42 = vpop.permute.xlu0 %3518  ;;  %v2832_v11 = vpop.permute.xlu1 %2831 }
0x1184   :  { %v2839_v14 = vsel %vm971_vm7, %v2838_v13, %v2832_v11  ;;  %v3529_v20 = vsel %vm281_vm2, %v3501_v16, %v3519_v42  ;;  %v3784_v42 = vld [vmem:[%s5269_s17 + $0x20] sm:$0xff]  ;;  %v3783_v11 = vld [vmem:[%s5269_s17 + $0x18] sm:$0xff]  ;;  %v3781_v13 = vld [vmem:[%s5269_s17 + $0x8] sm:$0xff] }
0x1188   :  { %v3523_v18 = vpop.permute.xlu0 %3522 }
0x1189   :  { %v3530_v21 = vsel %vm971_vm7, %v3529_v20, %v3523_v18 }
0x118d   :  { %v2836_v15 = vpop.permute.xlu1 %2835 }
0x118e   :  { %v2840_v19 = vsel %vm973_vm8, %v2839_v14, %v2836_v15  ;;  %v3780_v14 = vld [vmem:[%s5269_s17] sm:$0xff] }
0x118f   :  { %4515 = vmatprep.mubr.msk.f32.mxu0 %vm142_vm0, %v2840_v19  ;;  %v4124_v15 = vld [vmem:[%s4045_s20] ss:$0 sm:$0xff] }
0x1191   :  { %v3527_v22 = vpop.permute.xlu1 %3526 }
0x1192   :  { %v3531_v23 = vsel %vm973_vm8, %v3530_v21, %v3527_v22 }
0x1193   :  { %4516 = vmatmul.mubr.msk.f32.vlgmr.msra.gmra.mxu0 %vm142_vm0, %v3531_v23 }
0x1194   :  { %4530 = vmatpush3.msra.mxu0 %v3795_v62  ;;  %v3926_v62 = vld [vmem:[%s4050_s25 + $0x10] sm:$0xff] }
0x1195   :  { %4531 = vmatprep.subr.mxu0 %v3794_v2 }
0x1196   :  { %4532 = vmatpush3.msra.mxu0 %v3794_v2  ;;  %v3925_v2 = vld [vmem:[%s4050_s25 + $0x8] sm:$0xff] }
0x1197   :  { %4533 = vmatprep.subr.mxu0 %v3793_v44 }
0x1198   :  { %4534 = vmatpush3.msra.mxu0 %v3793_v44  ;;  %v3924_v44 = vld [vmem:[%s4050_s25] sm:$0xff] }
0x1199   :  { %4535 = vmatprep.subr.mxu0 %v3792_v4 }
0x119a   :  { %4536 = vmatpush3.msra.mxu0 %v3792_v4 }
0x119b   :  { %4537 = vmatprep.subr.mxu0 %v3791_v55 }
0x119c   :  { %4538 = vmatpush3.msra.mxu0 %v3791_v55 }
0x119d   :  { %4539 = vmatprep.subr.mxu0 %v3790_v6 }
0x119e   :  { %4540 = vmatpush3.msra.mxu0 %v3790_v6 }
0x119f   :  { %4541 = vmatprep.subr.mxu0 %v3789_v7 }
0x11a0   :  { %4542 = vmatpush3.msra.mxu0 %v3789_v7 }
0x11a1   :  { %4543 = vmatprep.subr.mxu0 %v3788_v8 }
0x11a2   :  { %4544 = vmatpush3.msra.mxu0 %v3788_v8 }
0x11a3   :  { %4545 = vmatprep.subr.mxu0 %v3787_v9 }
0x11a4   :  { %4546 = vmatpush3.msra.mxu0 %v3787_v9 }
0x11a5   :  { %4547 = vmatprep.subr.mxu0 %v3786_v40 }
0x11a6   :  { %4548 = vmatpush3.msra.mxu0 %v3786_v40 }
0x11a7   :  { %4549 = vmatprep.subr.mxu0 %v3785_v10 }
0x11a8   :  { %4550 = vmatpush3.msra.mxu0 %v3785_v10 }
0x11a9   :  { %4551 = vmatprep.subr.mxu0 %v3784_v42 }
0x11aa   :  { %4552 = vmatpush3.msra.mxu0 %v3784_v42 }
0x11ab   :  { %4553 = vmatprep.subr.mxu0 %v3783_v11 }
0x11ac   :  { %4554 = vmatpush3.msra.mxu0 %v3783_v11 }
0x11ad   :  { %4555 = vmatprep.subr.mxu0 %v3782_v12 }
0x11ae   :  { %4556 = vmatpush3.msra.mxu0 %v3782_v12  ;;  %v4128_v12 = vld [vmem:[%s4048_s29] ss:$0 sm:$0xff] }
0x11af   :  { %4557 = vmatprep.subr.mxu0 %v3781_v13 }
0x11b0   :  { %4558 = vmatpush3.msra.mxu0 %v3781_v13 }
0x11b1   :  { %4559 = vmatprep.subr.mxu0 %v3780_v14 }
0x11b2   :  { %4560 = vmatpush3.msra.mxu0 %v3780_v14  ;;  %v4129_v14 = vld [vmem:[%s4049_s8] ss:$0 sm:$0xff] }
0x1253   :  { %v4517_v24 = vpop.f32.mrf.mxu0 }
0x1254   :  { %v3621_v25 = vadd.f32 %v4517_v24, %v4119_v3 }
0x1255   :  { %v3615_v26 = vpop.f32.mrf.mxu0 }
0x1256   :  { %v5239_v27 = vadd.f32 %v3621_v25, %v5022_v60  ;;  %v3616_v28 = vadd.f32 %v4119_v3, %v3615_v26 }
0x1258   :  { %v5242_v29 = vadd.f32 %v3616_v28, %v5025_v63  ;;  %v3631_v30 = vsel %vm142_vm0, %v5239_v27, 0.0 }
0x1259   :  { %3632 = vadd.xlane.f32.xlu1 %v3631_v30 }
0x125a   :  { %v3628_v31 = vsel %vm142_vm0, %v5242_v29, 0.0 }
0x125b   :  { %3629 = vadd.xlane.f32.xlu0 %v3628_v31 }
0x12e2   :  { %v3633_v32 = vpop.xlane.xlu1 %3632 }
0x12e3   :  { %v3635_v35 = vmul.f32 0.03125, %v3633_v32 }
0x12e4   :  { %v3630_v36 = vpop.xlane.xlu0 %3629 }
0x12e5   :  { %v3634_v37 = vmul.f32 0.03125, %v3630_v36  ;;  %v3637_v41 = vsub.f32 %v5239_v27, %v3635_v35 }
0x12e7   :  { %v3636_v60 = vsub.f32 %v5242_v29, %v3634_v37  ;;  %v3639_v46 = vmul.f32 %v3637_v41, %v3637_v41 }
0x12e9   :  { %v3638_v45 = vmul.f32 %v3636_v60, %v3636_v60  ;;  %v3643_v47 = vsel %vm142_vm0, %v3639_v46, 0.0  ;;  %v4127_v46 = vld [vmem:[%s4047_s5] ss:$0 sm:$0xff] }
0x12eb   :  { %v3640_v63 = vsel %vm142_vm0, %v3638_v45, 0.0 }
0x12ec   :  { %3641 = vadd.xlane.f32.xlu0 %v3640_v63 }
0x12f0   :  { %3644 = vadd.xlane.f32.xlu0 %v3643_v47 }
0x1375   :  { %v3642_v61 = vpop.xlane.xlu0 %3641 }
0x1376   :  { %v3646_v50 = vmul.f32 0.03125, %v3642_v61 }
0x1378   :  { %v3648_v0 = vadd.f32 1e-05, %v3646_v50 }
0x1379   :  { %v3645_v51 = vpop.xlane.xlu0 %3644 }
0x137a   :  { %4679 = vrsqrt.f32 %v3648_v0  ;;  %v3647_v52 = vmul.f32 0.03125, %v3645_v51 }
0x137c   :  { %v3649_v39 = vadd.f32 1e-05, %v3647_v52 }
0x137e   :  { %4681 = vrsqrt.f32 %v3649_v39 }
0x1387   :  { %v4680_v5 = vpop.eup %4679 }
0x1388   :  { %v3652_v33 = vmul.f32 %v4680_v5, %v3636_v60 }
0x138a   :  { %v3660_v54 = vmul.f32 %v4122_v43, %v3652_v33 }
0x138b   :  { %v4682_v56 = vpop.eup %4681 }
0x138c   :  { %v3653_v57 = vmul.f32 %v4682_v56, %v3637_v41  ;;  %v3668_v58 = vadd.f32 %v4123_v53, %v3660_v54 }
0x138e   :  { %v3661_v59 = vmul.f32 %v4122_v43, %v3653_v57  ;;  %4526 = vmatprep.mubr.msk.f32.mxu1 %vm142_vm0, %v3668_v58  ;;  %v3930_v57 = vld [vmem:[%s4050_s25 + $0x30] sm:$0xff]  ;;  %v3929_v58 = vld [vmem:[%s4050_s25 + $0x28] sm:$0xff] }
0x1390   :  { %v3669_v38 = vadd.f32 %v4123_v53, %v3661_v59  ;;  %v3928_v59 = vld [vmem:[%s4050_s25 + $0x20] sm:$0xff] }
0x1392   :  { %4527 = vmatmul.mubr.msk.f32.vlgmr.msra.gmra.mxu1 %vm142_vm0, %v3669_v38  ;;  %v3927_v38 = vld [vmem:[%s4050_s25 + $0x18] sm:$0xff] }
0x1393   :  { %4002 = vmatprep.mubr.f32.mxu1 %v4694_v34 }
0x1452   :  { %v4528_v16 = vpop.f32.mrf.mxu1 }
0x1453   :  { %v3759_v18 = vadd.f32 %v4528_v16, %v4124_v15 }
0x1454   :  { %v3753_v19 = vpop.f32.mrf.mxu1 }
0x1455   :  { %v3765_v20 = vmul.f32 0.044715, %v3759_v18  ;;  %v3754_v21 = vadd.f32 %v4124_v15, %v3753_v19  ;;  %v3763_v60 = vmul.f32 0.5, %v3759_v18 }
0x1457   :  { %v3767_v22 = vmul.f32 %v3765_v20, %v3759_v18  ;;  %v3764_v23 = vmul.f32 0.044715, %v3754_v21  ;;  %v3762_v37 = vmul.f32 0.5, %v3754_v21 }
0x1459   :  { %v3769_v3 = vmul.f32 %v3767_v22, %v3759_v18  ;;  %v3766_v24 = vmul.f32 %v3764_v23, %v3754_v21 }
0x145b   :  { %v3771_v25 = vadd.f32 %v3769_v3, %v3759_v18  ;;  %v3768_v26 = vmul.f32 %v3766_v24, %v3754_v21 }
0x145d   :  { %v3770_v28 = vadd.f32 %v3768_v26, %v3754_v21  ;;  %v3773_v30 = vmul.f32 0.7978846, %v3771_v25 }
0x145f   :  { %v3772_v31 = vmul.f32 0.7978846, %v3770_v28  ;;  %4683 = vtanh.f32 %v3773_v30 }
0x1461   :  { %4685 = vtanh.f32 %v3772_v31 }
0x146c   :  { %v4684_v32 = vpop.eup %4683 }
0x146d   :  { %v3777_v36 = vadd.f32 1.0, %v4684_v32 }
0x146e   :  { %v4686_v35 = vpop.eup %4685 }
0x146f   :  { %v3776_v41 = vadd.f32 1.0, %v4686_v35  ;;  %v3779_v63 = vmul.f32 %v3777_v36, %v3763_v60 }
0x1471   :  { %v3778_v45 = vmul.f32 %v3776_v41, %v3762_v37 }
0x1473   :  { %4561 = vmatprep.mubr.f32.mxu0 %v3778_v45 }
0x1474   :  { %4562 = vmatmul.mubr.f32.vlgmr.msra.gmra.mxu0 %v3779_v63 }
0x1534   :  { %v4563_v47 = vpop.f32.mrf.mxu0 }
0x1535   :  { %v3875_v48 = vadd.f32 %v4563_v47, %v4127_v46 }
0x1536   :  { %v3869_v49 = vpop.f32.mrf.mxu0 }
0x1537   :  { %v3879_v17 = vadd.f32 %v3875_v48, %v5239_v27  ;;  %v3870_v1 = vadd.f32 %v4127_v46, %v3869_v49 }
0x1539   :  { %v3878_v61 = vadd.f32 %v3870_v1, %v5242_v29  ;;  %v3885_v50 = vsel %vm142_vm0, %v3879_v17, 0.0  ;;  %v3931_v29 = vld [vmem:[%s4050_s25 + $0x38] sm:$0xff] }
0x153a   :  { %3886 = vadd.xlane.f32.xlu0 %v3885_v50  ;;  %3962 = vmatprep.subr.mxu1 %v3931_v29 }
0x153b   :  { %v3882_v0 = vsel %vm142_vm0, %v3878_v61, 0.0  ;;  %3963 = vmatpush1.msra.mxu1 %v3930_v57 }
0x153c   :  { %3883 = vadd.xlane.f32.xlu1 %v3882_v0  ;;  %3964 = vmatprep.subr.mxu1 %v3929_v58 }
0x153d   :  { %3965 = vmatpush1.msra.mxu1 %v3928_v59 }
0x153e   :  { %3966 = vmatprep.subr.mxu1 %v3927_v38 }
0x153f   :  { %3967 = vmatpush1.msra.mxu1 %v3926_v62 }
0x1540   :  { %3968 = vmatprep.subr.mxu1 %v3925_v2 }
0x1541   :  { %3969 = vmatpush1.msra.mxu1 %v3924_v44 }
0x15c3   :  { %v3887_v51 = vpop.xlane.xlu0 %3886 }
0x15c4   :  { %v3889_v52 = vmul.f32 0.03125, %v3887_v51 }
0x15c5   :  { %v3884_v39 = vpop.xlane.xlu1 %3883 }
0x15c6   :  { %v3891_v5 = vsub.f32 %v3879_v17, %v3889_v52  ;;  %v3888_v43 = vmul.f32 0.03125, %v3884_v39 }
0x15c8   :  { %v3890_v33 = vsub.f32 %v3878_v61, %v3888_v43  ;;  %v3893_v53 = vmul.f32 %v3891_v5, %v3891_v5 }
0x15ca   :  { %v3897_v54 = vsel %vm142_vm0, %v3893_v53, 0.0  ;;  %v3892_v56 = vmul.f32 %v3890_v33, %v3890_v33 }
0x15cb   :  { %3898 = vadd.xlane.f32.xlu0 %v3897_v54 }
0x15cc   :  { %v3894_v27 = vsel %vm142_vm0, %v3892_v56, 0.0 }
0x15cd   :  { %3895 = vadd.xlane.f32.xlu1 %v3894_v27 }
0x1654   :  { %v3899_v4 = vpop.xlane.xlu0 %3898 }
0x1655   :  { %v3901_v55 = vmul.f32 0.03125, %v3899_v4 }
0x1656   :  { %v3896_v6 = vpop.xlane.xlu1 %3895 }
0x1657   :  { %v3903_v7 = vadd.f32 1e-05, %v3901_v55  ;;  %v3900_v8 = vmul.f32 0.03125, %v3896_v6 }
0x1659   :  { %4687 = vrsqrt.f32 %v3903_v7  ;;  %v3902_v9 = vadd.f32 1e-05, %v3900_v8 }
0x165b   :  { %4689 = vrsqrt.f32 %v3902_v9 }
0x1666   :  { %v4688_v40 = vpop.eup %4687 }
0x1667   :  { %v3907_v11 = vmul.f32 %v4688_v40, %v3891_v5 }
0x1668   :  { %v4690_v10 = vpop.eup %4689 }
0x1669   :  { %v3906_v42 = vmul.f32 %v4690_v10, %v3890_v33  ;;  %v3915_v16 = vmul.f32 %v4128_v12, %v3907_v11 }
0x166b   :  { %v3914_v13 = vmul.f32 %v4128_v12, %v3906_v42  ;;  %v3923_v18 = vadd.f32 %v4129_v14, %v3915_v16 }
0x166d   :  { %v3922_v15 = vadd.f32 %v4129_v14, %v3914_v13 }
0x166f   :  { %4130 = vmatmul.mubr.msk.f32.vlgmr.msra.gmra.mxu1 %vm142_vm0, %v3922_v15 }
0x1670   :  { %4008 = vmatprep.mubr.f32.mxu1 %v4694_v34 }
0x1673   :  { %4131 = vmatmul.mubr.msk.f32.gmra.mxu1 %vm142_vm0, %v3923_v18 }
0x172f   :  { %v4004_v19 = vpop.f32.mrf.mxu1 }
0x1730   :  { %4015 = vst [vmem:[%s4051_s12] sm:$0xff] %v4004_v19 }
0x1731   :  { %v4006_v20 = vpop.f32.mrf.mxu1 }
0x1732   :  { %4016 = vst [vmem:[%s4051_s12 + $0x8] sm:$0xff] %v4006_v20 }
0x1733   :  { %v4010_v21 = vpop.f32.mrf.mxu1 }
0x1734   :  { %4017 = vst [vmem:[%s4051_s12 + $0x10] sm:$0xff] %v4010_v21 }
0x1735   :  { %v4012_v22 = vpop.f32.mrf.mxu1 }
0x1736   :  { %4018 = vst [vmem:[%s4051_s12 + $0x18] sm:$0xff] %v4012_v22 }

</bundles_post_ra>
